<compile_context>
chip_gen: v6e
topology: v6e:2x2x1
jax: 0.10.0
libtpu: 0.0.40
codegen_flags: <defaults>
</compile_context>

<pallas_src>
import jax
import jax.numpy as jnp
from jax.experimental import pallas as pl
from jax.experimental.pallas import tpu as pltpu

EPS = 1e-5
VMEM_LIMIT = 32 * 1024 * 1024   # well under v7x's 64 MiB physical VMEM


# ------------------------------ small helpers -------------------------------

def _pad128(c):
    return ((c + 127) // 128) * 128


def _pad_ch(x, c_pad):
    pad = c_pad - x.shape[-1]
    if pad == 0:
        return x
    cfg = [(0, 0)] * (x.ndim - 1) + [(0, pad)]
    return jnp.pad(x, cfg)


def _prep_w3x3(w, cin_p, cout_p):
    # torch (out, in, 3, 3) -> (9, cin_p, cout_p), tap index k = dy*3 + dx
    out_c, in_c = w.shape[0], w.shape[1]
    wt = jnp.transpose(w, (2, 3, 1, 0)).reshape(9, in_c, out_c)
    return jnp.pad(wt, ((0, 0), (0, cin_p - in_c), (0, cout_p - out_c)))


def _prep_w1x1(w, cin_p, cout_p):
    out_c, in_c = w.shape[0], w.shape[1]
    wt = jnp.transpose(w[:, :, 0, 0], (1, 0))          # (in, out)
    return jnp.pad(wt, ((0, cin_p - in_c), (0, cout_p - out_c)))


def _prep_vec(v, c_pad):
    v = v.reshape(1, -1)
    return jnp.pad(v, ((0, 0), (0, c_pad - v.shape[1])))


def _pick_rows(m, target=512):
    # largest multiple-of-8 divisor of m that is <= target (else the full m)
    for c in range(target, 7, -8):
        if m % c == 0:
            return c
    return m


def _pick_band(ho, wo, target_rows=512):
    th = max(1, min(ho, target_rows // max(wo, 1)))
    while ho % th:
        th -= 1
    return th


def _make_phases(x, s):
    """Pad (1,1) spatially and split into s*s stride-phases, concatenated along H.

    Returns (N, s*s*Hq, Wq, C), Ho, Wo, Hq.  Tap (dy, dx) of a stride-s 3x3
    conv reads phase p = (dy%s)*s + (dx%s) at unstrided offsets (dy//s, dx//s).
    Total data volume == input (no 9x im2col expansion).
    """
    n, h, w, c = x.shape
    ho = (h + 2 - 3) // s + 1
    wo = (w + 2 - 3) // s + 1
    hq = ho + 2 // s
    wq = wo + 2 // s
    xp = jnp.pad(x, ((0, 0), (1, 1), (1, 1), (0, 0)))
    phases = []
    for a in range(s):
        for b in range(s):
            ph = xp[:, a::s, b::s, :][:, :hq, :wq, :]
            ph = jnp.pad(ph, ((0, 0), (0, hq - ph.shape[1]),
                              (0, wq - ph.shape[2]), (0, 0)))
            phases.append(ph)
    return jnp.concatenate(phases, axis=1), ho, wo, hq


# ----------------------- fused conv3x3 (+1x1) + BN stats ---------------------

def _make_conv_kernel(s, th, wo, hq, has_sc):
    """9-tap shifted matmuls + per-channel sum / sum^2 accumulation.

    Grid is (N, Ho//th).  The BN-stat outputs map every grid point to block
    (0, 0) so they stay VMEM-resident and accumulate across the whole grid.
    When has_sc, the stride-s 1x1 shortcut conv reuses the tap-(1,1) tile.
    """
    def kernel(ph_ref, w_ref, *rest):
        if has_sc:
            ws_ref, o_ref, y_ref, s1_ref, q1_ref, s3_ref, q3_ref = rest
        else:
            o_ref, s1_ref, q1_ref = rest

        first = (pl.program_id(0) == 0) & (pl.program_id(1) == 0)

        @pl.when(first)
        def _init():
            s1_ref[...] = jnp.zeros(s1_ref.shape, jnp.float32)
            q1_ref[...] = jnp.zeros(q1_ref.shape, jnp.float32)
            if has_sc:
                s3_ref[...] = jnp.zeros(s3_ref.shape, jnp.float32)
                q3_ref[...] = jnp.zeros(q3_ref.shape, jnp.float32)

        cin = ph_ref.shape[-1]
        cout = o_ref.shape[-1]
        row0 = pl.program_id(1) * th

        acc = jnp.zeros((th * wo, cout), jnp.float32)
        for dy in range(3):
            for dx in range(3):
                p = (dy % s) * s + (dx % s)
                qy, qx = dy // s, dx // s
                a = ph_ref[0, pl.ds(row0 + (p * hq + qy), th), pl.ds(qx, wo), :]
                a2 = a.reshape(th * wo, cin)                       # lane-dense (.., 128k)
                acc = acc + jnp.dot(a2, w_ref[dy * 3 + dx],
                                    preferred_element_type=jnp.float32)
                if has_sc and dy == 1 and dx == 1:
                    # tap (1,1) of padded input == x[s*ho, s*wo] == 1x1 shortcut input
                    csc = y_ref.shape[-1]
                    y = jnp.dot(a2, ws_ref[...],
                                preferred_element_type=jnp.float32)
                    y_ref[...] = y.reshape(1, th, wo, csc)
                    s3_ref[...] += jnp.sum(y, axis=0, keepdims=True)
                    q3_ref[...] += jnp.sum(y * y, axis=0, keepdims=True)

        o_ref[...] = acc.reshape(1, th, wo, cout)
        s1_ref[...] += jnp.sum(acc, axis=0, keepdims=True)
        q1_ref[...] += jnp.sum(acc * acc, axis=0, keepdims=True)

    return kernel


def _conv3x3_fused(phases, w_taps, ws, s, ho, wo, hq, th):
    n = phases.shape[0]
    phq, wq, cin = phases.shape[1], phases.shape[2], phases.shape[3]
    cout = w_taps.shape[-1]
    nb = ho // th
    has_sc = ws is not None
    kernel = _make_conv_kernel(s, th, wo, hq, has_sc)

    in_specs = [
        pl.BlockSpec((1, phq, wq, cin), lambda ni, bi: (ni, 0, 0, 0)),
        pl.BlockSpec((9, cin, cout), lambda ni, bi: (0, 0, 0)),
    ]
    args = [phases, w_taps]
    out_shape = [jax.ShapeDtypeStruct((n, ho, wo, cout), jnp.float32)]
    out_specs = [pl.BlockSpec((1, th, wo, cout), lambda ni, bi: (ni, bi, 0, 0))]
    if has_sc:
        csc = ws.shape[-1]
        in_specs.append(pl.BlockSpec((cin, csc), lambda ni, bi: (0, 0)))
        args.append(ws)
        out_shape.append(jax.ShapeDtypeStruct((n, ho, wo, csc), jnp.float32))
        out_specs.append(pl.BlockSpec((1, th, wo, csc),
                                      lambda ni, bi: (ni, bi, 0, 0)))
    # BN stats for the main conv (sum, sum of squares)
    out_shape += [jax.ShapeDtypeStruct((1, cout), jnp.float32)] * 2
    out_specs += [pl.BlockSpec((1, cout), lambda ni, bi: (0, 0))] * 2
    if has_sc:
        csc = ws.shape[-1]
        out_shape += [jax.ShapeDtypeStruct((1, csc), jnp.float32)] * 2
        out_specs += [pl.BlockSpec((1, csc), lambda ni, bi: (0, 0))] * 2

    return pl.pallas_call(
        kernel,
        grid=(n, nb),
        in_specs=in_specs,
        out_specs=tuple(out_specs),
        out_shape=tuple(out_shape),
        compiler_params=pltpu.CompilerParams(
            dimension_semantics=("arbitrary", "arbitrary"),
            vmem_limit_bytes=VMEM_LIMIT),
    )(*args)


# -------------------- BN apply / residual / ReLU epilogues -------------------

def _bn_scale_shift(s_ref, q_ref, g_ref, b_ref, inv_m):
    mean = s_ref[...] * inv_m
    var = jnp.maximum(q_ref[...] * inv_m - mean * mean, 0.0)
    scale = g_ref[...] * jax.lax.rsqrt(var + EPS)
    shift = b_ref[...] - mean * scale
    return scale, shift


def _make_bn_relu_kernel(inv_m):
    def kernel(x_ref, s_ref, q_ref, g_ref, b_ref, o_ref):
        scale, shift = _bn_scale_shift(s_ref, q_ref, g_ref, b_ref, inv_m)
        o_ref[...] = jnp.maximum(x_ref[...] * scale + shift, 0.0)
    return kernel


def _make_final_identity_kernel(inv_m):
    def kernel(x_ref, s_ref, q_ref, g_ref, b_ref, r_ref, o_ref):
        scale, shift = _bn_scale_shift(s_ref, q_ref, g_ref, b_ref, inv_m)
        o_ref[...] = jnp.maximum(x_ref[...] * scale + shift + r_ref[...], 0.0)
    return kernel


def _make_final_shortcut_kernel(inv_m):
    def kernel(x_ref, s2_ref, q2_ref, g2_ref, b2_ref,
               y_ref, s3_ref, q3_ref, g3_ref, b3_ref, o_ref):
        sc2, sh2 = _bn_scale_shift(s2_ref, q2_ref, g2_ref, b2_ref, inv_m)
        sc3, sh3 = _bn_scale_shift(s3_ref, q3_ref, g3_ref, b3_ref, inv_m)
        o_ref[...] = jnp.maximum(
            x_ref[...] * sc2 + sh2 + y_ref[...] * sc3 + sh3, 0.0)
    return kernel


def _bn_apply_call(kernel, args, m, c_out, tm):
    # Row-tiled, lane-dense elementwise pass.  Args of shape (1, C) (stats /
    # gamma / beta) are replicated to every grid step; (M, C) args are tiled.
    def spec_for(a):
        if a.shape[0] == 1:
            return pl.BlockSpec((1, a.shape[1]), lambda i: (0, 0))
        return pl.BlockSpec((tm, a.shape[1]), lambda i: (i, 0))

    return pl.pallas_call(
        kernel,
        grid=(m // tm,),
        in_specs=[spec_for(a) for a in args],
        out_specs=pl.BlockSpec((tm, c_out), lambda i: (i, 0)),
        out_shape=jax.ShapeDtypeStruct((m, c_out), jnp.float32),
        compiler_params=pltpu.CompilerParams(
            dimension_semantics=("parallel",),
            vmem_limit_bytes=VMEM_LIMIT),
    )(*args)


# ------------------------------ parameter init -------------------------------

def init_params(key, in_planes, planes, wider=1, stride=1, iters=1):
    width = planes * wider
    has_shortcut = (stride != 1) or (in_planes != planes)
    ks = jax.random.split(key, 10)
    p = {
        # PyTorch conv weight layout (out, in, kh, kw), bias=False
        'w1': 0.1 * jax.random.normal(ks[0], (width, in_planes, 3, 3), jnp.float32),
        'w2': 0.1 * jax.random.normal(ks[1], (planes, width, 3, 3), jnp.float32),
    }
    if has_shortcut:
        p['ws'] = 0.1 * jax.random.normal(ks[2], (planes, in_planes, 1, 1), jnp.float32)

    def vec(k, t, c, around_one):
        v = 0.1 * jax.random.normal(jax.random.fold_in(k, t), (c,), jnp.float32)
        return v + 1.0 if around_one else v

    p['g1'] = [vec(ks[3], t, width, True) for t in range(iters)]
    p['b1'] = [vec(ks[4], t, width, False) for t in range(iters)]
    p['g2'] = [vec(ks[5], t, planes, True) for t in range(iters)]
    p['b2'] = [vec(ks[6], t, planes, False) for t in range(iters)]
    if has_shortcut:
        p['g3'] = [vec(ks[7], t, planes, True) for t in range(iters)]
        p['b3'] = [vec(ks[8], t, planes, False) for t in range(iters)]
    return p, has_shortcut


# ------------------------------ forward (Pallas) ------------------------------

def forward_pallas(x_nchw, p, stride, iters, has_shortcut):
    x = jnp.transpose(x_nchw, (0, 2, 3, 1)).astype(jnp.float32)   # NCHW -> NHWC
    in_planes = p['w1'].shape[1]
    width = p['w1'].shape[0]
    planes = p['w2'].shape[0]
    cin_p = _pad128(in_planes)
    wid_p = _pad128(width)
    pl_p = _pad128(planes)

    if not has_shortcut:
        assert stride == 1 and in_planes == planes       # identity residual req.
    if iters > 1:
        assert in_planes == planes                       # conv1 reapplied to output

    x = _pad_ch(x, cin_p)                                # lane-dense channels
    w1m = _prep_w3x3(p['w1'], cin_p, wid_p)              # (9, cin_p, wid_p)
    w2m = _prep_w3x3(p['w2'], wid_p, pl_p)               # (9, wid_p, pl_p)
    wsm = _prep_w1x1(p['ws'], cin_p, pl_p) if has_shortcut else None

    for t in range(iters):
        n = x.shape[0]

        # ---- stage 1: conv1 (3x3, stride) [+ fused 1x1 shortcut] + BN stats
        ph1, ho, wo, hq1 = _make_phases(x, stride)
        th1 = _pick_band(ho, wo)
        outs = _conv3x3_fused(ph1, w1m, wsm, stride, ho, wo, hq1, th1)
        if has_shortcut:
            h1_raw, y_raw, s1, q1, s3, q3 = outs
        else:
            h1_raw, s1, q1 = outs

        m = n * ho * wo
        inv_m = 1.0 / m
        tm = _pick_rows(m)

        # ---- stage 2: BN1 apply + ReLU (one-pass stats, f32)
        g1 = _prep_vec(p['g1'][t], wid_p)
        b1 = _prep_vec(p['b1'][t], wid_p)
        h1_act = _bn_apply_call(_make_bn_relu_kernel(inv_m),
                                (h1_raw.reshape(m, wid_p), s1, q1, g1, b1),
                                m, wid_p, tm)

        # ---- stage 3: conv2 (3x3, stride 1) + BN stats
        ph2, ho2, wo2, hq2 = _make_phases(h1_act.reshape(n, ho, wo, wid_p), 1)
        th2 = _pick_band(ho2, wo2)
        h2_raw, s2, q2 = _conv3x3_fused(ph2, w2m, None, 1, ho2, wo2, hq2, th2)

        # ---- stage 4: BN2 apply + residual (BN3 or identity) + ReLU
        g2 = _prep_vec(p['g2'][t], pl_p)
        b2 = _prep_vec(p['b2'][t], pl_p)
        h2f = h2_raw.reshape(m, pl_p)
        if has_shortcut:
            g3 = _prep_vec(p['g3'][t], pl_p)
            b3 = _prep_vec(p['b3'][t], pl_p)
            out = _bn_apply_call(
                _make_final_shortcut_kernel(inv_m),
                (h2f, s2, q2, g2, b2, y_raw.reshape(m, pl_p), s3, q3, g3, b3),
                m, pl_p, tm)
        else:
            out = _bn_apply_call(
                _make_final_identity_kernel(inv_m),
                (h2f, s2, q2, g2, b2, x.reshape(m, pl_p)),
                m, pl_p, tm)

        x = out.reshape(n, ho, wo, pl_p)

    out = x[..., :planes]                                # drop channel padding
    return jnp.transpose(out, (0, 3, 1, 2))              # NHWC -> NCHW


# ---------------------- pure-JAX reference (NCHW) ----------------------------

def forward_ref(x, p, stride, iters, has_shortcut):
    def conv(x, w, s, pad):
        return jax.lax.conv_general_dilated(
            x, w, (s, s), [(pad, pad), (pad, pad)],
            dimension_numbers=('NCHW', 'OIHW', 'NCHW'))

    def bn(x, g, b):
        m = jnp.mean(x, axis=(0, 2, 3), keepdims=True)
        v = jnp.mean((x - m) ** 2, axis=(0, 2, 3), keepdims=True)
        return (x - m) / jnp.sqrt(v + EPS) * g.reshape(1, -1, 1, 1) + b.reshape(1, -1, 1, 1)

    for t in range(iters):
        x_i = x
        h = jax.nn.relu(bn(conv(x, p['w1'], stride, 1), p['g1'][t], p['b1'][t]))
        h = bn(conv(h, p['w2'], 1, 1), p['g2'][t], p['b2'][t])
        if has_shortcut:
            h = h + bn(conv(x_i, p['ws'], stride, 0), p['g3'][t], p['b3'][t])
        else:
            h = h + x_i
        x = jax.nn.relu(h)
    return x


# ---------------------------------- main -------------------------------------

if __name__ == "__main__":
    key = jax.random.PRNGKey(0)

    # Config A: downsampling block with 1x1 shortcut (stride=2, channel change).
    kp, kx = jax.random.split(key)
    params_a, sc_a = init_params(kp, in_planes=4, planes=8, wider=1, stride=2, iters=1)
    x_a = jax.random.normal(kx, (2, 4, 16, 16), jnp.float32)      # NCHW
    out_a = jax.block_until_ready(forward_pallas(x_a, params_a, 2, 1, sc_a))
    ref_a = forward_ref(x_a, params_a, 2, 1, sc_a)
    assert out_a.shape == (2, 8, 8, 8)
    assert jnp.allclose(out_a, ref_a, atol=1e-2, rtol=1e-2)

    # Config B: identity-shortcut block, two folded iterations.
    kp2, kx2 = jax.random.split(jax.random.PRNGKey(1))
    params_b, sc_b = init_params(kp2, in_planes=8, planes=8, wider=1, stride=1, iters=2)
    x_b = jax.random.normal(kx2, (2, 8, 16, 16), jnp.float32)     # NCHW
    out_b = jax.block_until_ready(forward_pallas(x_b, params_b, 1, 2, sc_b))
    ref_b = forward_ref(x_b, params_b, 1, 2, sc_b)
    assert out_b.shape == (2, 8, 16, 16)
    assert jnp.allclose(out_b, ref_b, atol=1e-2, rtol=1e-2)

    print("KERNEL_OK")
</pallas_src>

<mosaic_0001>
module attributes {stable_mosaic.version = 11 : i64} {
  func.func @kernel(%arg0: i32, %arg1: i32, %arg2: memref<1x36x9x128xf32, #tpu.memory_space<vmem>>, %arg3: memref<9x128x128xf32, #tpu.memory_space<vmem>>, %arg4: memref<128x128xf32, #tpu.memory_space<vmem>>, %arg5: memref<1x8x8x128xf32, #tpu.memory_space<vmem>>, %arg6: memref<1x8x8x128xf32, #tpu.memory_space<vmem>>, %arg7: memref<1x128xf32, #tpu.memory_space<vmem>>, %arg8: memref<1x128xf32, #tpu.memory_space<vmem>>, %arg9: memref<1x128xf32, #tpu.memory_space<vmem>>, %arg10: memref<1x128xf32, #tpu.memory_space<vmem>>) attributes {dimension_semantics = [#tpu.dimension_semantics<arbitrary>, #tpu.dimension_semantics<arbitrary>], iteration_bounds = array<i64: 2, 1>, scalar_prefetch = 0 : i64, scratch_operands = 0 : i64, tpu.core_type = #tpu.core_type<tc>, window_params = [{transform_indices = @transform_0, window_bounds = array<i64: 1, 36, 9, 128>}, {pipeline_mode = #tpu.pipeline_mode<synchronous>, transform_indices = @transform_1, window_bounds = array<i64: 9, 128, 128>}, {pipeline_mode = #tpu.pipeline_mode<synchronous>, transform_indices = @transform_2, window_bounds = array<i64: 128, 128>}, {transform_indices = @transform_3, window_bounds = array<i64: 1, 8, 8, 128>}, {transform_indices = @transform_4, window_bounds = array<i64: 1, 8, 8, 128>}, {pipeline_mode = #tpu.pipeline_mode<synchronous>, transform_indices = @transform_5, window_bounds = array<i64: 1, 128>}, {pipeline_mode = #tpu.pipeline_mode<synchronous>, transform_indices = @transform_6, window_bounds = array<i64: 1, 128>}, {pipeline_mode = #tpu.pipeline_mode<synchronous>, transform_indices = @transform_7, window_bounds = array<i64: 1, 128>}, {pipeline_mode = #tpu.pipeline_mode<synchronous>, transform_indices = @transform_8, window_bounds = array<i64: 1, 128>}]} {
    %c0_i32 = arith.constant 0 : i32
    %0 = arith.cmpi eq, %arg0, %c0_i32 : i32
    %c0_i32_0 = arith.constant 0 : i32
    %1 = arith.cmpi eq, %arg1, %c0_i32_0 : i32
    %2 = arith.andi %0, %1 : i1
    %3 = arith.extui %2 : i1 to i32
    %c0_i32_1 = arith.constant 0 : i32
    %4 = arith.cmpi ne, %3, %c0_i32_1 : i32
    scf.if %4 {
      %cst_91 = arith.constant 0.000000e+00 : f32
      %116 = vector.broadcast %cst_91 : f32 to vector<1x128xf32>
      %c0_92 = arith.constant 0 : index
      %c0_93 = arith.constant 0 : index
      %117 = vector.load %arg7[%c0_92, %c0_93] : memref<1x128xf32, #tpu.memory_space<vmem>>, vector<1x128xf32>
      tpu.vector_store %arg7[%c0_92, %c0_93], %116 {strides = array<i32>} : memref<1x128xf32, #tpu.memory_space<vmem>>, vector<1x128xf32>,
      %cst_94 = arith.constant 0.000000e+00 : f32
      %118 = vector.broadcast %cst_94 : f32 to vector<1x128xf32>
      %c0_95 = arith.constant 0 : index
      %c0_96 = arith.constant 0 : index
      %119 = vector.load %arg8[%c0_95, %c0_96] : memref<1x128xf32, #tpu.memory_space<vmem>>, vector<1x128xf32>
      tpu.vector_store %arg8[%c0_95, %c0_96], %118 {strides = array<i32>} : memref<1x128xf32, #tpu.memory_space<vmem>>, vector<1x128xf32>,
      %cst_97 = arith.constant 0.000000e+00 : f32
      %120 = vector.broadcast %cst_97 : f32 to vector<1x128xf32>
      %c0_98 = arith.constant 0 : index
      %c0_99 = arith.constant 0 : index
      %121 = vector.load %arg9[%c0_98, %c0_99] : memref<1x128xf32, #tpu.memory_space<vmem>>, vector<1x128xf32>
      tpu.vector_store %arg9[%c0_98, %c0_99], %120 {strides = array<i32>} : memref<1x128xf32, #tpu.memory_space<vmem>>, vector<1x128xf32>,
      %cst_100 = arith.constant 0.000000e+00 : f32
      %122 = vector.broadcast %cst_100 : f32 to vector<1x128xf32>
      %c0_101 = arith.constant 0 : index
      %c0_102 = arith.constant 0 : index
      %123 = vector.load %arg10[%c0_101, %c0_102] : memref<1x128xf32, #tpu.memory_space<vmem>>, vector<1x128xf32>
      tpu.vector_store %arg10[%c0_101, %c0_102], %122 {strides = array<i32>} : memref<1x128xf32, #tpu.memory_space<vmem>>, vector<1x128xf32>,
    } else {
    }
    %c8_i32 = arith.constant 8 : i32
    %5 = arith.muli %arg1, %c8_i32 : i32
    %cst = arith.constant 0.000000e+00 : f32
    %6 = vector.broadcast %cst : f32 to vector<64x128xf32>
    %c0_i32_2 = arith.constant 0 : i32
    %7 = arith.addi %5, %c0_i32_2 : i32
    %c0 = arith.constant 0 : index
    %8 = arith.index_cast %7 : i32 to index
    %c0_3 = arith.constant 0 : index
    %c0_4 = arith.constant 0 : index
    %9 = vector.load %arg2[%c0, %8, %c0_3, %c0_4] : memref<1x36x9x128xf32, #tpu.memory_space<vmem>>, vector<1x8x8x128xf32>
    %10 = vector.shape_cast %9 : vector<1x8x8x128xf32> to vector<8x8x128xf32>
    %11 = vector.shape_cast %10 : vector<8x8x128xf32> to vector<64x128xf32>
    %c0_5 = arith.constant 0 : index
    %c0_6 = arith.constant 0 : index
    %c0_7 = arith.constant 0 : index
    %12 = vector.load %arg3[%c0_5, %c0_6, %c0_7] : memref<9x128x128xf32, #tpu.memory_space<vmem>>, vector<1x128x128xf32>
    %13 = vector.shape_cast %12 : vector<1x128x128xf32> to vector<128x128xf32>
    %cst_8 = arith.constant dense<0.000000e+00> : vector<64x128xf32>
    %14 = tpu.matmul %11, %13, %cst_8 {dimension_numbers = #tpu.dot_dimension_numbers<[1], [0], [0], [1], [0, 0, 1, 1], [], []>} : vector<64x128xf32>, vector<128x128xf32>, vector<64x128xf32> -> vector<64x128xf32>
    %15 = arith.addf %6, %14 : vector<64x128xf32>
    %c9_i32 = arith.constant 9 : i32
    %16 = arith.addi %5, %c9_i32 : i32
    %c0_9 = arith.constant 0 : index
    %17 = arith.index_cast %16 : i32 to index
    %c0_10 = arith.constant 0 : index
    %c0_11 = arith.constant 0 : index
    %18 = vector.load %arg2[%c0_9, %17, %c0_10, %c0_11] : memref<1x36x9x128xf32, #tpu.memory_space<vmem>>, vector<1x8x8x128xf32>
    %19 = vector.shape_cast %18 : vector<1x8x8x128xf32> to vector<8x8x128xf32>
    %20 = vector.shape_cast %19 : vector<8x8x128xf32> to vector<64x128xf32>
    %c1 = arith.constant 1 : index
    %c0_12 = arith.constant 0 : index
    %c0_13 = arith.constant 0 : index
    %21 = vector.load %arg3[%c1, %c0_12, %c0_13] : memref<9x128x128xf32, #tpu.memory_space<vmem>>, vector<1x128x128xf32>
    %22 = vector.shape_cast %21 : vector<1x128x128xf32> to vector<128x128xf32>
    %cst_14 = arith.constant dense<0.000000e+00> : vector<64x128xf32>
    %23 = tpu.matmul %20, %22, %cst_14 {dimension_numbers = #tpu.dot_dimension_numbers<[1], [0], [0], [1], [0, 0, 1, 1], [], []>} : vector<64x128xf32>, vector<128x128xf32>, vector<64x128xf32> -> vector<64x128xf32>
    %24 = arith.addf %15, %23 : vector<64x128xf32>
    %c0_i32_15 = arith.constant 0 : i32
    %25 = arith.addi %5, %c0_i32_15 : i32
    %c0_16 = arith.constant 0 : index
    %26 = arith.index_cast %25 : i32 to index
    %c1_17 = arith.constant 1 : index
    %c0_18 = arith.constant 0 : index
    %27 = vector.load %arg2[%c0_16, %26, %c1_17, %c0_18] : memref<1x36x9x128xf32, #tpu.memory_space<vmem>>, vector<1x8x8x128xf32>
    %28 = vector.shape_cast %27 : vector<1x8x8x128xf32> to vector<8x8x128xf32>
    %29 = vector.shape_cast %28 : vector<8x8x128xf32> to vector<64x128xf32>
    %c2 = arith.constant 2 : index
    %c0_19 = arith.constant 0 : index
    %c0_20 = arith.constant 0 : index
    %30 = vector.load %arg3[%c2, %c0_19, %c0_20] : memref<9x128x128xf32, #tpu.memory_space<vmem>>, vector<1x128x128xf32>
    %31 = vector.shape_cast %30 : vector<1x128x128xf32> to vector<128x128xf32>
    %cst_21 = arith.constant dense<0.000000e+00> : vector<64x128xf32>
    %32 = tpu.matmul %29, %31, %cst_21 {dimension_numbers = #tpu.dot_dimension_numbers<[1], [0], [0], [1], [0, 0, 1, 1], [], []>} : vector<64x128xf32>, vector<128x128xf32>, vector<64x128xf32> -> vector<64x128xf32>
    %33 = arith.addf %24, %32 : vector<64x128xf32>
    %c18_i32 = arith.constant 18 : i32
    %34 = arith.addi %5, %c18_i32 : i32
    %c0_22 = arith.constant 0 : index
    %35 = arith.index_cast %34 : i32 to index
    %c0_23 = arith.constant 0 : index
    %c0_24 = arith.constant 0 : index
    %36 = vector.load %arg2[%c0_22, %35, %c0_23, %c0_24] : memref<1x36x9x128xf32, #tpu.memory_space<vmem>>, vector<1x8x8x128xf32>
    %37 = vector.shape_cast %36 : vector<1x8x8x128xf32> to vector<8x8x128xf32>
    %38 = vector.shape_cast %37 : vector<8x8x128xf32> to vector<64x128xf32>
    %c3 = arith.constant 3 : index
    %c0_25 = arith.constant 0 : index
    %c0_26 = arith.constant 0 : index
    %39 = vector.load %arg3[%c3, %c0_25, %c0_26] : memref<9x128x128xf32, #tpu.memory_space<vmem>>, vector<1x128x128xf32>
    %40 = vector.shape_cast %39 : vector<1x128x128xf32> to vector<128x128xf32>
    %cst_27 = arith.constant dense<0.000000e+00> : vector<64x128xf32>
    %41 = tpu.matmul %38, %40, %cst_27 {dimension_numbers = #tpu.dot_dimension_numbers<[1], [0], [0], [1], [0, 0, 1, 1], [], []>} : vector<64x128xf32>, vector<128x128xf32>, vector<64x128xf32> -> vector<64x128xf32>
    %42 = arith.addf %33, %41 : vector<64x128xf32>
    %c27_i32 = arith.constant 27 : i32
    %43 = arith.addi %5, %c27_i32 : i32
    %c0_28 = arith.constant 0 : index
    %44 = arith.index_cast %43 : i32 to index
    %c0_29 = arith.constant 0 : index
    %c0_30 = arith.constant 0 : index
    %45 = vector.load %arg2[%c0_28, %44, %c0_29, %c0_30] : memref<1x36x9x128xf32, #tpu.memory_space<vmem>>, vector<1x8x8x128xf32>
    %46 = vector.shape_cast %45 : vector<1x8x8x128xf32> to vector<8x8x128xf32>
    %47 = vector.shape_cast %46 : vector<8x8x128xf32> to vector<64x128xf32>
    %c4 = arith.constant 4 : index
    %c0_31 = arith.constant 0 : index
    %c0_32 = arith.constant 0 : index
    %48 = vector.load %arg3[%c4, %c0_31, %c0_32] : memref<9x128x128xf32, #tpu.memory_space<vmem>>, vector<1x128x128xf32>
    %49 = vector.shape_cast %48 : vector<1x128x128xf32> to vector<128x128xf32>
    %cst_33 = arith.constant dense<0.000000e+00> : vector<64x128xf32>
    %50 = tpu.matmul %47, %49, %cst_33 {dimension_numbers = #tpu.dot_dimension_numbers<[1], [0], [0], [1], [0, 0, 1, 1], [], []>} : vector<64x128xf32>, vector<128x128xf32>, vector<64x128xf32> -> vector<64x128xf32>
    %51 = arith.addf %42, %50 : vector<64x128xf32>
    %c0_34 = arith.constant 0 : index
    %c0_35 = arith.constant 0 : index
    %52 = vector.load %arg4[%c0_34, %c0_35] : memref<128x128xf32, #tpu.memory_space<vmem>>, vector<128x128xf32>
    %cst_36 = arith.constant dense<0.000000e+00> : vector<64x128xf32>
    %53 = tpu.matmul %47, %52, %cst_36 {dimension_numbers = #tpu.dot_dimension_numbers<[1], [0], [0], [1], [0, 0, 1, 1], [], []>} : vector<64x128xf32>, vector<128x128xf32>, vector<64x128xf32> -> vector<64x128xf32>
    %54 = vector.shape_cast %53 : vector<64x128xf32> to vector<1x8x8x128xf32>
    %c0_37 = arith.constant 0 : index
    %c0_38 = arith.constant 0 : index
    %c0_39 = arith.constant 0 : index
    %c0_40 = arith.constant 0 : index
    %55 = vector.load %arg6[%c0_37, %c0_38, %c0_39, %c0_40] : memref<1x8x8x128xf32, #tpu.memory_space<vmem>>, vector<1x8x8x128xf32>
    tpu.vector_store %arg6[%c0_37, %c0_38, %c0_39, %c0_40], %54 {strides = array<i32>} : memref<1x8x8x128xf32, #tpu.memory_space<vmem>>, vector<1x8x8x128xf32>,
    %c0_41 = arith.constant 0 : index
    %c0_42 = arith.constant 0 : index
    %56 = vector.load %arg9[%c0_41, %c0_42] : memref<1x128xf32, #tpu.memory_space<vmem>>, vector<1x128xf32>
    %cst_43 = arith.constant dense<0.000000e+00> : vector<128xf32>
    %57 = vector.multi_reduction <add>, %53, %cst_43 [0] : vector<64x128xf32> to vector<128xf32>
    %58 = vector.shape_cast %57 : vector<128xf32> to vector<1x128xf32>
    %59 = arith.addf %56, %58 : vector<1x128xf32>
    %c0_44 = arith.constant 0 : index
    %c0_45 = arith.constant 0 : index
    %60 = vector.load %arg9[%c0_44, %c0_45] : memref<1x128xf32, #tpu.memory_space<vmem>>, vector<1x128xf32>
    tpu.vector_store %arg9[%c0_44, %c0_45], %59 {strides = array<i32>} : memref<1x128xf32, #tpu.memory_space<vmem>>, vector<1x128xf32>,
    %c0_46 = arith.constant 0 : index
    %c0_47 = arith.constant 0 : index
    %61 = vector.load %arg10[%c0_46, %c0_47] : memref<1x128xf32, #tpu.memory_space<vmem>>, vector<1x128xf32>
    %62 = arith.mulf %53, %53 : vector<64x128xf32>
    %cst_48 = arith.constant dense<0.000000e+00> : vector<128xf32>
    %63 = vector.multi_reduction <add>, %62, %cst_48 [0] : vector<64x128xf32> to vector<128xf32>
    %64 = vector.shape_cast %63 : vector<128xf32> to vector<1x128xf32>
    %65 = arith.addf %61, %64 : vector<1x128xf32>
    %c0_49 = arith.constant 0 : index
    %c0_50 = arith.constant 0 : index
    %66 = vector.load %arg10[%c0_49, %c0_50] : memref<1x128xf32, #tpu.memory_space<vmem>>, vector<1x128xf32>
    tpu.vector_store %arg10[%c0_49, %c0_50], %65 {strides = array<i32>} : memref<1x128xf32, #tpu.memory_space<vmem>>, vector<1x128xf32>,
    %c18_i32_51 = arith.constant 18 : i32
    %67 = arith.addi %5, %c18_i32_51 : i32
    %c0_52 = arith.constant 0 : index
    %68 = arith.index_cast %67 : i32 to index
    %c1_53 = arith.constant 1 : index
    %c0_54 = arith.constant 0 : index
    %69 = vector.load %arg2[%c0_52, %68, %c1_53, %c0_54] : memref<1x36x9x128xf32, #tpu.memory_space<vmem>>, vector<1x8x8x128xf32>
    %70 = vector.shape_cast %69 : vector<1x8x8x128xf32> to vector<8x8x128xf32>
    %71 = vector.shape_cast %70 : vector<8x8x128xf32> to vector<64x128xf32>
    %c5 = arith.constant 5 : index
    %c0_55 = arith.constant 0 : index
    %c0_56 = arith.constant 0 : index
    %72 = vector.load %arg3[%c5, %c0_55, %c0_56] : memref<9x128x128xf32, #tpu.memory_space<vmem>>, vector<1x128x128xf32>
    %73 = vector.shape_cast %72 : vector<1x128x128xf32> to vector<128x128xf32>
    %cst_57 = arith.constant dense<0.000000e+00> : vector<64x128xf32>
    %74 = tpu.matmul %71, %73, %cst_57 {dimension_numbers = #tpu.dot_dimension_numbers<[1], [0], [0], [1], [0, 0, 1, 1], [], []>} : vector<64x128xf32>, vector<128x128xf32>, vector<64x128xf32> -> vector<64x128xf32>
    %75 = arith.addf %51, %74 : vector<64x128xf32>
    %c1_i32 = arith.constant 1 : i32
    %76 = arith.addi %5, %c1_i32 : i32
    %c0_58 = arith.constant 0 : index
    %77 = arith.index_cast %76 : i32 to index
    %c0_59 = arith.constant 0 : index
    %c0_60 = arith.constant 0 : index
    %78 = vector.load %arg2[%c0_58, %77, %c0_59, %c0_60] : memref<1x36x9x128xf32, #tpu.memory_space<vmem>>, vector<1x8x8x128xf32>
    %79 = vector.shape_cast %78 : vector<1x8x8x128xf32> to vector<8x8x128xf32>
    %80 = vector.shape_cast %79 : vector<8x8x128xf32> to vector<64x128xf32>
    %c6 = arith.constant 6 : index
    %c0_61 = arith.constant 0 : index
    %c0_62 = arith.constant 0 : index
    %81 = vector.load %arg3[%c6, %c0_61, %c0_62] : memref<9x128x128xf32, #tpu.memory_space<vmem>>, vector<1x128x128xf32>
    %82 = vector.shape_cast %81 : vector<1x128x128xf32> to vector<128x128xf32>
    %cst_63 = arith.constant dense<0.000000e+00> : vector<64x128xf32>
    %83 = tpu.matmul %80, %82, %cst_63 {dimension_numbers = #tpu.dot_dimension_numbers<[1], [0], [0], [1], [0, 0, 1, 1], [], []>} : vector<64x128xf32>, vector<128x128xf32>, vector<64x128xf32> -> vector<64x128xf32>
    %84 = arith.addf %75, %83 : vector<64x128xf32>
    %c10_i32 = arith.constant 10 : i32
    %85 = arith.addi %5, %c10_i32 : i32
    %c0_64 = arith.constant 0 : index
    %86 = arith.index_cast %85 : i32 to index
    %c0_65 = arith.constant 0 : index
    %c0_66 = arith.constant 0 : index
    %87 = vector.load %arg2[%c0_64, %86, %c0_65, %c0_66] : memref<1x36x9x128xf32, #tpu.memory_space<vmem>>, vector<1x8x8x128xf32>
    %88 = vector.shape_cast %87 : vector<1x8x8x128xf32> to vector<8x8x128xf32>
    %89 = vector.shape_cast %88 : vector<8x8x128xf32> to vector<64x128xf32>
    %c7 = arith.constant 7 : index
    %c0_67 = arith.constant 0 : index
    %c0_68 = arith.constant 0 : index
    %90 = vector.load %arg3[%c7, %c0_67, %c0_68] : memref<9x128x128xf32, #tpu.memory_space<vmem>>, vector<1x128x128xf32>
    %91 = vector.shape_cast %90 : vector<1x128x128xf32> to vector<128x128xf32>
    %cst_69 = arith.constant dense<0.000000e+00> : vector<64x128xf32>
    %92 = tpu.matmul %89, %91, %cst_69 {dimension_numbers = #tpu.dot_dimension_numbers<[1], [0], [0], [1], [0, 0, 1, 1], [], []>} : vector<64x128xf32>, vector<128x128xf32>, vector<64x128xf32> -> vector<64x128xf32>
    %93 = arith.addf %84, %92 : vector<64x128xf32>
    %c1_i32_70 = arith.constant 1 : i32
    %94 = arith.addi %5, %c1_i32_70 : i32
    %c0_71 = arith.constant 0 : index
    %95 = arith.index_cast %94 : i32 to index
    %c1_72 = arith.constant 1 : index
    %c0_73 = arith.constant 0 : index
    %96 = vector.load %arg2[%c0_71, %95, %c1_72, %c0_73] : memref<1x36x9x128xf32, #tpu.memory_space<vmem>>, vector<1x8x8x128xf32>
    %97 = vector.shape_cast %96 : vector<1x8x8x128xf32> to vector<8x8x128xf32>
    %98 = vector.shape_cast %97 : vector<8x8x128xf32> to vector<64x128xf32>
    %c8 = arith.constant 8 : index
    %c0_74 = arith.constant 0 : index
    %c0_75 = arith.constant 0 : index
    %99 = vector.load %arg3[%c8, %c0_74, %c0_75] : memref<9x128x128xf32, #tpu.memory_space<vmem>>, vector<1x128x128xf32>
    %100 = vector.shape_cast %99 : vector<1x128x128xf32> to vector<128x128xf32>
    %cst_76 = arith.constant dense<0.000000e+00> : vector<64x128xf32>
    %101 = tpu.matmul %98, %100, %cst_76 {dimension_numbers = #tpu.dot_dimension_numbers<[1], [0], [0], [1], [0, 0, 1, 1], [], []>} : vector<64x128xf32>, vector<128x128xf32>, vector<64x128xf32> -> vector<64x128xf32>
    %102 = arith.addf %93, %101 : vector<64x128xf32>
    %103 = vector.shape_cast %102 : vector<64x128xf32> to vector<1x8x8x128xf32>
    %c0_77 = arith.constant 0 : index
    %c0_78 = arith.constant 0 : index
    %c0_79 = arith.constant 0 : index
    %c0_80 = arith.constant 0 : index
    %104 = vector.load %arg5[%c0_77, %c0_78, %c0_79, %c0_80] : memref<1x8x8x128xf32, #tpu.memory_space<vmem>>, vector<1x8x8x128xf32>
    tpu.vector_store %arg5[%c0_77, %c0_78, %c0_79, %c0_80], %103 {strides = array<i32>} : memref<1x8x8x128xf32, #tpu.memory_space<vmem>>, vector<1x8x8x128xf32>,
    %c0_81 = arith.constant 0 : index
    %c0_82 = arith.constant 0 : index
    %105 = vector.load %arg7[%c0_81, %c0_82] : memref<1x128xf32, #tpu.memory_space<vmem>>, vector<1x128xf32>
    %cst_83 = arith.constant dense<0.000000e+00> : vector<128xf32>
    %106 = vector.multi_reduction <add>, %102, %cst_83 [0] : vector<64x128xf32> to vector<128xf32>
    %107 = vector.shape_cast %106 : vector<128xf32> to vector<1x128xf32>
    %108 = arith.addf %105, %107 : vector<1x128xf32>
    %c0_84 = arith.constant 0 : index
    %c0_85 = arith.constant 0 : index
    %109 = vector.load %arg7[%c0_84, %c0_85] : memref<1x128xf32, #tpu.memory_space<vmem>>, vector<1x128xf32>
    tpu.vector_store %arg7[%c0_84, %c0_85], %108 {strides = array<i32>} : memref<1x128xf32, #tpu.memory_space<vmem>>, vector<1x128xf32>,
    %c0_86 = arith.constant 0 : index
    %c0_87 = arith.constant 0 : index
    %110 = vector.load %arg8[%c0_86, %c0_87] : memref<1x128xf32, #tpu.memory_space<vmem>>, vector<1x128xf32>
    %111 = arith.mulf %102, %102 : vector<64x128xf32>
    %cst_88 = arith.constant dense<0.000000e+00> : vector<128xf32>
    %112 = vector.multi_reduction <add>, %111, %cst_88 [0] : vector<64x128xf32> to vector<128xf32>
    %113 = vector.shape_cast %112 : vector<128xf32> to vector<1x128xf32>
    %114 = arith.addf %110, %113 : vector<1x128xf32>
    %c0_89 = arith.constant 0 : index
    %c0_90 = arith.constant 0 : index
    %115 = vector.load %arg8[%c0_89, %c0_90] : memref<1x128xf32, #tpu.memory_space<vmem>>, vector<1x128xf32>
    tpu.vector_store %arg8[%c0_89, %c0_90], %114 {strides = array<i32>} : memref<1x128xf32, #tpu.memory_space<vmem>>, vector<1x128xf32>,
    return
  }
  func.func @transform_0(%arg0: i32, %arg1: i32) -> (i32, i32, i32, i32) {
    %c0_i32 = arith.constant 0 : i32
    %c0_i32_0 = arith.constant 0 : i32
    %c0_i32_1 = arith.constant 0 : i32
    %c0_i32_2 = arith.constant 0 : i32
    return %arg0, %c0_i32, %c0_i32_0, %c0_i32_1 : i32, i32, i32, i32
  }
  func.func @transform_1(%arg0: i32, %arg1: i32) -> (i32, i32, i32) {
    %c0_i32 = arith.constant 0 : i32
    %c0_i32_0 = arith.constant 0 : i32
    %c0_i32_1 = arith.constant 0 : i32
    %c0_i32_2 = arith.constant 0 : i32
    return %c0_i32, %c0_i32_0, %c0_i32_1 : i32, i32, i32
  }
  func.func @transform_2(%arg0: i32, %arg1: i32) -> (i32, i32) {
    %c0_i32 = arith.constant 0 : i32
    %c0_i32_0 = arith.constant 0 : i32
    %c0_i32_1 = arith.constant 0 : i32
    return %c0_i32, %c0_i32_0 : i32, i32
  }
  func.func @transform_3(%arg0: i32, %arg1: i32) -> (i32, i32, i32, i32) {
    %c0_i32 = arith.constant 0 : i32
    %c0_i32_0 = arith.constant 0 : i32
    %c0_i32_1 = arith.constant 0 : i32
    return %arg0, %arg1, %c0_i32, %c0_i32_0 : i32, i32, i32, i32
  }
  func.func @transform_4(%arg0: i32, %arg1: i32) -> (i32, i32, i32, i32) {
    %c0_i32 = arith.constant 0 : i32
    %c0_i32_0 = arith.constant 0 : i32
    %c0_i32_1 = arith.constant 0 : i32
    return %arg0, %arg1, %c0_i32, %c0_i32_0 : i32, i32, i32, i32
  }
  func.func @transform_5(%arg0: i32, %arg1: i32) -> (i32, i32) {
    %c0_i32 = arith.constant 0 : i32
    %c0_i32_0 = arith.constant 0 : i32
    %c0_i32_1 = arith.constant 0 : i32
    return %c0_i32, %c0_i32_0 : i32, i32
  }
  func.func @transform_6(%arg0: i32, %arg1: i32) -> (i32, i32) {
    %c0_i32 = arith.constant 0 : i32
    %c0_i32_0 = arith.constant 0 : i32
    %c0_i32_1 = arith.constant 0 : i32
    return %c0_i32, %c0_i32_0 : i32, i32
  }
  func.func @transform_7(%arg0: i32, %arg1: i32) -> (i32, i32) {
    %c0_i32 = arith.constant 0 : i32
    %c0_i32_0 = arith.constant 0 : i32
    %c0_i32_1 = arith.constant 0 : i32
    return %c0_i32, %c0_i32_0 : i32, i32
  }
  func.func @transform_8(%arg0: i32, %arg1: i32) -> (i32, i32) {
    %c0_i32 = arith.constant 0 : i32
    %c0_i32_0 = arith.constant 0 : i32
    %c0_i32_1 = arith.constant 0 : i32
    return %c0_i32, %c0_i32_0 : i32, i32
  }
}

</mosaic_0001>

<bundles_post_ra>
// kernel: tpu_custom_call.1
= control target key start
LH: loop header
LB: loop body
LE: loop exit
PB: predicated region body
PF: predicated region fallthrough
CT: control target
= control target key end

     0   :  { %s4188_s0 = inlined_call_operand.vmem [shape: f32[2,36,9,128], index: 0, kind: input, shape index: {}]   ;;  %s4189_s1 = inlined_call_operand.vmem [shape: f32[9,128,128], index: 1, kind: input, shape index: {}]   ;;  %s4190_s2 = inlined_call_operand.vmem [shape: f32[128,128], index: 2, kind: input, shape index: {}]   ;;  %s4191_s3 = inlined_call_operand.hbm [shape: f32[2,8,8,128], index: 3, kind: output, shape index: {0}]   ;;  %s4192_s4 = inlined_call_operand.hbm [shape: f32[2,8,8,128], index: 4, kind: output, shape index: {1}]   ;;  %s4193_s5 = inlined_call_operand.hbm [shape: f32[1,128], index: 5, kind: output, shape index: {2}]   ;;  %s4194_s6 = inlined_call_operand.hbm [shape: f32[1,128], index: 6, kind: output, shape index: {3}]   ;;  %s4195_s7 = inlined_call_operand.hbm [shape: f32[1,128], index: 7, kind: output, shape index: {4}]   ;;  %s4196_s8 = inlined_call_operand.hbm [shape: f32[1,128], index: 8, kind: output, shape index: {5}]  }
   0x1   :  { %4202 = sst [smem:[#allocation18_spill]] %s4188_s0 }
   0x2   :  { %14 = vsyncpa [#allocation3], 0 }
   0x3   :  { %16 = vsyncpa [#allocation3 + $0x1], 0 }
   0x4   :  { %17 = vsyncpa [#allocation5], 0 }
   0x5   :  { %19 = vsyncpa [#allocation5 + $0x1], 0 }
   0x6   :  { %20 = vsyncpa [#allocation8], 0 }
   0x7   :  { %21 = vsyncpa [#allocation11], 0  ;;  %s3302_s27 = smov 0   ;;  %s3304_s28 = smov 0  }
   0x8   :  { %s3306_s29 = smov 0   ;;  %s3308_s30 = smov 0  }
   0x9   :  { %s3310_s9 = smov 0   ;;  %s3312_s10 = smov 0  }
   0xa LB: > { %s4199_s11 = sadd.s32 4294967295, %s3246_s10   ;;  %s4197_s12 = sadd.s32 4294967294, %s3246_s10   ;;  %s3246_s10 = sphi %s3312_s10, %s27_s10   ;;  %s3242_s9 = sphi %s3310_s9, %s4218_s9   ;;  %s3238_s30 = sphi %s3308_s30, %s4217_s30   ;;  %s3234_s29 = sphi %s3306_s29, %s4216_s29   ;;  %s3230_s28 = sphi %s3304_s28, %s4215_s28   ;;  %s3226_s27 = sphi %s3302_s27, %s4214_s27  }
   0xb   : > { %s39_s13 = sadd.s32 1, %s3242_s9  ;;  %s116_s14 = sadd.s32 1, %s3234_s29 }
   0xc   : > { %p41_p0 = scmp.ge.s32.totalorder %s39_s13, 2  ;;  %p126_p1 = scmp.ne.s32.totalorder %s3234_s29, %s3230_s28 }
   0xd   : > { %p3340_p2 = scmp.eq.s32.totalorder %s4199_s11, 1  ;;  %p132_p3 = scmp.ne.s32.totalorder %s3230_s28, %s3226_s27 }
   0xe   : > { %s4220_s13 = smov (%p41_p0, %s39_s13), 0  ;;  %p133_p5 = scmp.eq.s32.totalorder %s4197_s12, 1 }
   0xf   : > { %4204 = sst [smem:[#allocation17_spill]] %s4220_s13  ;;  %p3350_p4 = por %p3340_p2, %p126_p1 }
  0x10   : > { %s111_s17 = ssub.s32 %s3242_s9, %s4220_s13  ;;  %p2052_p6 = scmp.ge.s32.totalorder %s3246_s10, 1 }
  0x11   : > { %p114_p7 = scmp.eq.s32.totalorder %s111_s17, 0  ;;  %p3359_p8 = por %p133_p5, %p132_p3 }
  0x12   : > { %p277_p9 = scmp.lt.s32.totalorder %s3246_s10, 3 }
  0x13   : > { %s3365_s19 = scalar_select %p114_p7, %s3234_s29, %s116_s14  }
  0x14   : > { %p278_p10 = pnand %p2052_p6, %p277_p9 }
  0x15   : > { %s4198_s20 = sand.u32 (!%p278_p10), 1, %s3230_s28   ;;  %p316_p11 = scmp.lt.s32.totalorder (!%p278_p10), %s3238_s30, 1 }
  0x16   : > { %281 = sbr.rel (%p278_p10) target bundleno = 497 (0x1f1), region = 32  ;;  %s2053_s21 = sshll.u32 (!%p278_p10), %s4198_s20, 6 }
  0x17   : > { %p323_p12 = scmp.eq.s32.totalorder (!%p278_p10), %s3238_s30, 0  ;;  %s4207_s0 = sld [smem:[#allocation18_spill]] (!%p278_p10) }
  0x18   : > { %s3378_s14 = scalar_lea.vmem (!%p278_p10), [#allocation2], %s2053_s21  ;;  %s3380_s17 = scalar_lea.vmem (!%p278_p10), [#allocation4], %s2053_s21 }
  0x1b   : > { %s317_s22 = scalar_select %p316_p11, %s3238_s30, 1  ;;  %v3248_v0 = vmov (%p323_p12), 0.0  }
  0x1c   : > { %328 = sbr.rel (!%p323_p12) target bundleno = 33 (0x21), region = 36  ;;  %329 = vst [vmem:[#allocation6] sm:$0x1] (%p323_p12), %v3248_v0  ;;  %330 = vst [vmem:[#allocation7] sm:$0x1] (%p323_p12), %v3248_v0 }
  0x1d   : > { %s2940_s23 = smul.u32 576, %s317_s22  ;;  %331 = vst [vmem:[#allocation9] sm:$0x1] (%p323_p12), %v3248_v0  ;;  %332 = vst [vmem:[#allocation10] sm:$0x1] (%p323_p12), %v3248_v0 }
  0x1f   : > { %s3376_s26 = scalar_lea.vmem %s4207_s0, %s2940_s23 }
  0x21 PF: > { %v2080_v1 = vld [vmem:[%s4189_s1 + $0xf8] sm:$0xff]  ;;  %v2079_v3 = vld [vmem:[%s4189_s1 + $0xf0] sm:$0xff]  ;;  %v2078_v5 = vld [vmem:[%s4189_s1 + $0xe8] sm:$0xff]  ;;  %s4201_s20 = sshll.u32 %s3238_s30, 10  ;;  %s1832_s11 = sshll.u32 %s3380_s17, 4  ;;  %s4033_s11 = int_to_ptr.vmem [resolvable:$true] %s1832_s11 }
  0x22   : > { %v359_v2 = vld [vmem:[%s4189_s1 + $0x78] sm:$0xff]  ;;  %2500 = vmatprep.subr.mxu0 %v2080_v1  ;;  %v358_v4 = vld [vmem:[%s4189_s1 + $0x70] sm:$0xff]  ;;  %v357_v6 = vld [vmem:[%s4189_s1 + $0x68] sm:$0xff]  ;;  %s4031_s24 = scalar_lea.hbm %s4192_s4, %s4201_s20  ;;  %s3032_s13 = scalar_lea.vmem %s4033_s11, 1024 }
  0x23   : > { %2544 = vmatprep.subr.mxu1 %v359_v2  ;;  %2501 = vmatpush3.msra.mxu0 %v2080_v1  ;;  %v2077_v7 = vld [vmem:[%s4189_s1 + $0xe0] sm:$0xff]  ;;  %v2076_v9 = vld [vmem:[%s4189_s1 + $0xd8] sm:$0xff]  ;;  %v2075_v11 = vld [vmem:[%s4189_s1 + $0xd0] sm:$0xff]  ;;  %p3033_p13 = scmp.ne.s32.totalorder %s4033_s11, %s3032_s13  ;;  %s3249_s21 = smov [#allocation4]  }
  0x24   : > { %2545 = vmatpush3.msra.mxu1 %v359_v2  ;;  %2502 = vmatprep.subr.mxu0 %v2079_v3  ;;  %v356_v8 = vld [vmem:[%s4189_s1 + $0x60] sm:$0xff]  ;;  %v355_v10 = vld [vmem:[%s4189_s1 + $0x58] sm:$0xff]  ;;  %v354_v12 = vld [vmem:[%s4189_s1 + $0x50] sm:$0xff]  ;;  %s3036_s25 = sshll.u32 %s3249_s21, 4  ;;  %s3037_s25 = int_to_ptr.vmem [resolvable:$false] %s3036_s25 }
  0x25   : > { %2546 = vmatprep.subr.mxu1 %v358_v4  ;;  %2503 = vmatpush3.msra.mxu0 %v2079_v3  ;;  %v2074_v13 = vld [vmem:[%s4189_s1 + $0xc8] sm:$0xff]  ;;  %v2073_v15 = vld [vmem:[%s4189_s1 + $0xc0] sm:$0xff]  ;;  %v2072_v17 = vld [vmem:[%s4189_s1 + $0xb8] sm:$0xff]  ;;  %p3034_p0 = pnand %p3033_p13, %p3350_p4  ;;  %p3039_p3 = scmp.lt.s32.totalorder %s4033_s11, %s3037_s25 }
  0x26   : > { %2547 = vmatpush3.msra.mxu1 %v358_v4  ;;  %2504 = vmatprep.subr.mxu0 %v2078_v5  ;;  %v353_v14 = vld [vmem:[%s4189_s1 + $0x48] sm:$0xff]  ;;  %v352_v16 = vld [vmem:[%s4189_s1 + $0x40] sm:$0xff]  ;;  %v351_v18 = vld [vmem:[%s4189_s1 + $0x38] sm:$0xff] }
  0x27   : > { %2548 = vmatprep.subr.mxu1 %v357_v6  ;;  %2505 = vmatpush3.msra.mxu0 %v2078_v5  ;;  %v2071_v19 = vld [vmem:[%s4189_s1 + $0xb0] sm:$0xff]  ;;  %v2070_v21 = vld [vmem:[%s4189_s1 + $0xa8] sm:$0xff]  ;;  %v2069_v23 = vld [vmem:[%s4189_s1 + $0xa0] sm:$0xff]  ;;  %p3035_p1 = pneg %p3034_p0 }
  0x28   : > { %2549 = vmatpush3.msra.mxu1 %v357_v6  ;;  %2506 = vmatprep.subr.mxu0 %v2077_v7  ;;  %v350_v20 = vld [vmem:[%s4189_s1 + $0x30] sm:$0xff]  ;;  %v349_v22 = vld [vmem:[%s4189_s1 + $0x28] sm:$0xff]  ;;  %v348_v24 = vld [vmem:[%s4189_s1 + $0x20] sm:$0xff] }
  0x29   : > { %2550 = vmatprep.subr.mxu1 %v356_v8  ;;  %2507 = vmatpush3.msra.mxu0 %v2077_v7  ;;  %v2068_v25 = vld [vmem:[%s4189_s1 + $0x98] sm:$0xff]  ;;  %v2067_v27 = vld [vmem:[%s4189_s1 + $0x90] sm:$0xff]  ;;  %v2066_v29 = vld [vmem:[%s4189_s1 + $0x88] sm:$0xff] }
  0x2a   : > { %2551 = vmatpush3.msra.mxu1 %v356_v8  ;;  %2508 = vmatprep.subr.mxu0 %v2076_v9  ;;  %v347_v26 = vld [vmem:[%s4189_s1 + $0x18] sm:$0xff]  ;;  %v346_v28 = vld [vmem:[%s4189_s1 + $0x10] sm:$0xff]  ;;  %v345_v30 = vld [vmem:[%s4189_s1 + $0x8] sm:$0xff] }
  0x2b   : > { %2552 = vmatprep.subr.mxu1 %v355_v10  ;;  %2509 = vmatpush3.msra.mxu0 %v2076_v9  ;;  %v2065_v31 = vld [vmem:[%s4189_s1 + $0x80] sm:$0xff]  ;;  %v2057_v33 = vld [vmem:[%s3376_s26 + $0x90] sm:$0xff]  ;;  %v2096_v37 = vld [vmem:[%s4189_s1 + $0x178] sm:$0xff] }
  0x2c   : > { %2553 = vmatpush3.msra.mxu1 %v355_v10  ;;  %2510 = vmatprep.subr.mxu0 %v2075_v11  ;;  %v344_v32 = vld [vmem:[%s4189_s1] sm:$0xff]  ;;  %v3484_v36 = vld [vmem:[%s3376_s26 + $0x10] sm:$0xff]  ;;  %v2120_v38 = vld [vmem:[%s4189_s1 + $0x1f8] sm:$0xff] }
  0x2d   : > { %2554 = vmatprep.subr.mxu1 %v354_v12  ;;  %2511 = vmatpush3.msra.mxu0 %v2075_v11  ;;  %v336_v34 = vld [vmem:[%s3376_s26] sm:$0xff]  ;;  %v2095_v39 = vld [vmem:[%s4189_s1 + $0x170] sm:$0xff]  ;;  %v2094_v41 = vld [vmem:[%s4189_s1 + $0x168] sm:$0xff] }
  0x2e   : > { %2555 = vmatpush3.msra.mxu1 %v354_v12  ;;  %2512 = vmatprep.subr.mxu0 %v2074_v13  ;;  %v3481_v35 = vld [vmem:[%s3376_s26 + $0xa0] sm:$0xff]  ;;  %v2119_v40 = vld [vmem:[%s4189_s1 + $0x1f0] sm:$0xff]  ;;  %v2118_v42 = vld [vmem:[%s4189_s1 + $0x1e8] sm:$0xff] }
  0x2f   : > { %2556 = vmatprep.subr.mxu1 %v353_v14  ;;  %2513 = vmatpush3.msra.mxu0 %v2074_v13  ;;  %v2093_v43 = vld [vmem:[%s4189_s1 + $0x160] sm:$0xff]  ;;  %v2092_v45 = vld [vmem:[%s4189_s1 + $0x158] sm:$0xff]  ;;  %v2091_v47 = vld [vmem:[%s4189_s1 + $0x150] sm:$0xff] }
  0x30   : > { %2557 = vmatpush3.msra.mxu1 %v353_v14  ;;  %2514 = vmatprep.subr.mxu0 %v2073_v15  ;;  %v2117_v44 = vld [vmem:[%s4189_s1 + $0x1e0] sm:$0xff]  ;;  %v2116_v46 = vld [vmem:[%s4189_s1 + $0x1d8] sm:$0xff]  ;;  %v2115_v48 = vld [vmem:[%s4189_s1 + $0x1d0] sm:$0xff] }
  0x31   : > { %2558 = vmatprep.subr.mxu1 %v352_v16  ;;  %2515 = vmatpush3.msra.mxu0 %v2073_v15  ;;  %v2090_v49 = vld [vmem:[%s4189_s1 + $0x148] sm:$0xff]  ;;  %v2089_v51 = vld [vmem:[%s4189_s1 + $0x140] sm:$0xff]  ;;  %v2088_v53 = vld [vmem:[%s4189_s1 + $0x138] sm:$0xff] }
  0x32   : > { %2559 = vmatpush3.msra.mxu1 %v352_v16  ;;  %2516 = vmatprep.subr.mxu0 %v2072_v17  ;;  %v2114_v50 = vld [vmem:[%s4189_s1 + $0x1c8] sm:$0xff]  ;;  %v2113_v52 = vld [vmem:[%s4189_s1 + $0x1c0] sm:$0xff]  ;;  %v2112_v54 = vld [vmem:[%s4189_s1 + $0x1b8] sm:$0xff] }
  0x33   : > { %2560 = vmatprep.subr.mxu1 %v351_v18  ;;  %2517 = vmatpush3.msra.mxu0 %v2072_v17  ;;  %v3543_v55 = vld [vmem:[%s3376_s26 + $0xb0] sm:$0xff]  ;;  %v3546_v56 = vld [vmem:[%s3376_s26 + $0x20] sm:$0xff]  ;;  %v2086_v61 = vld [vmem:[%s4189_s1 + $0x128] sm:$0xff] }
  0x34   : > { %2561 = vmatpush3.msra.mxu1 %v351_v18  ;;  %2518 = vmatprep.subr.mxu0 %v2071_v19  ;;  %v2087_v57 = vld [vmem:[%s4189_s1 + $0x130] sm:$0xff]  ;;  %v3555_v59 = vld [vmem:[%s3376_s26 + $0xc0] sm:$0xff]  ;;  %v2110_v62 = vld [vmem:[%s4189_s1 + $0x1a8] sm:$0xff] }
  0x35   : > { %2562 = vmatprep.subr.mxu1 %v350_v20  ;;  %2519 = vmatpush3.msra.mxu0 %v2071_v19  ;;  %v2111_v58 = vld [vmem:[%s4189_s1 + $0x1b0] sm:$0xff]  ;;  %v3574_v0 = vld [vmem:[%s3376_s26 + $0x40] sm:$0xff]  ;;  %v2084_v5 = vld [vmem:[%s4189_s1 + $0x118] sm:$0xff] }
  0x36   : > { %2563 = vmatpush3.msra.mxu1 %v350_v20  ;;  %2520 = vmatprep.subr.mxu0 %v2070_v21  ;;  %v3558_v60 = vld [vmem:[%s3376_s26 + $0x30] sm:$0xff]  ;;  %v2085_v1 = vld [vmem:[%s4189_s1 + $0x120] sm:$0xff]  ;;  %v2108_v6 = vld [vmem:[%s4189_s1 + $0x198] sm:$0xff] }
  0x37   : > { %2564 = vmatprep.subr.mxu1 %v349_v22  ;;  %2521 = vmatpush3.msra.mxu0 %v2070_v21  ;;  %v3571_v63 = vld [vmem:[%s3376_s26 + $0xd0] sm:$0xff]  ;;  %v2109_v2 = vld [vmem:[%s4189_s1 + $0x1a0] sm:$0xff]  ;;  %v2082_v13 = vld [vmem:[%s4189_s1 + $0x108] sm:$0xff] }
  0x38   : > { %2565 = vmatpush3.msra.mxu1 %v349_v22  ;;  %2522 = vmatprep.subr.mxu0 %v2069_v23  ;;  %v3583_v3 = vld [vmem:[%s3376_s26 + $0xe0] sm:$0xff]  ;;  %v3586_v4 = vld [vmem:[%s3376_s26 + $0x50] sm:$0xff]  ;;  %v2106_v14 = vld [vmem:[%s4189_s1 + $0x188] sm:$0xff] }
  0x39   : > { %2566 = vmatprep.subr.mxu1 %v348_v24  ;;  %2523 = vmatpush3.msra.mxu0 %v2069_v23  ;;  %v3599_v7 = vld [vmem:[%s3376_s26 + $0xf0] sm:$0xff]  ;;  %v3602_v8 = vld [vmem:[%s3376_s26 + $0x60] sm:$0xff]  ;;  %v2144_v20 = vld [vmem:[%s4189_s1 + $0x278] sm:$0xff] }
  0x3a   : > { %2567 = vmatpush3.msra.mxu1 %v348_v24  ;;  %2524 = vmatprep.subr.mxu0 %v2068_v25  ;;  %v2083_v9 = vld [vmem:[%s4189_s1 + $0x110] sm:$0xff]  ;;  %v3611_v11 = vld [vmem:[%s3376_s26 + $0x100] sm:$0xff]  ;;  %v1033_v21 = vld [vmem:[%s4190_s2 + $0x78] sm:$0xff] }
  0x3b   : > { %2568 = vmatprep.subr.mxu1 %v347_v26  ;;  %2525 = vmatpush3.msra.mxu0 %v2068_v25  ;;  %v2107_v10 = vld [vmem:[%s4189_s1 + $0x190] sm:$0xff]  ;;  %v2081_v15 = vld [vmem:[%s4189_s1 + $0x100] sm:$0xff] }
  0x3c   : > { %2569 = vmatpush3.msra.mxu1 %v347_v26  ;;  %2526 = vmatprep.subr.mxu0 %v2067_v27  ;;  %v3614_v12 = vld [vmem:[%s3376_s26 + $0x70] sm:$0xff]  ;;  %v2105_v16 = vld [vmem:[%s4189_s1 + $0x180] sm:$0xff] }
  0x3d   : > { %2570 = vmatprep.subr.mxu1 %v346_v28  ;;  %2527 = vmatpush3.msra.mxu0 %v2067_v27  ;;  %v598_v17 = vld [vmem:[%s3376_s26 + $0x1] sm:$0xff]  ;;  %v3634_v18 = vld [vmem:[%s3376_s26 + $0x11] sm:$0xff] }
  0x3e   : > { %2571 = vmatpush3.msra.mxu1 %v346_v28  ;;  %2528 = vmatprep.subr.mxu0 %v2066_v29  ;;  %v2097_v19 = vld [vmem:[%s3376_s26 + $0x120] sm:$0xff]  ;;  %v2098_v22 = vld [vmem:[%s3376_s26 + $0x130] sm:$0xff]  ;;  %v2142_v27 = vld [vmem:[%s4189_s1 + $0x268] sm:$0xff] }
  0x3f   : > { %2572 = vmatprep.subr.mxu1 %v345_v30  ;;  %2529 = vmatpush3.msra.mxu0 %v2066_v29  ;;  %v2143_v23 = vld [vmem:[%s4189_s1 + $0x270] sm:$0xff]  ;;  %v3652_v25 = vld [vmem:[%s3376_s26 + $0x21] sm:$0xff] }
  0x40   : > { %2573 = vmatpush3.msra.mxu1 %v345_v30  ;;  %2530 = vmatprep.subr.mxu0 %v2065_v31  ;;  %v1032_v24 = vld [vmem:[%s4190_s2 + $0x70] sm:$0xff]  ;;  %v1031_v28 = vld [vmem:[%s4190_s2 + $0x68] sm:$0xff]  ;;  %v2099_v29 = vld [vmem:[%s3376_s26 + $0x140] sm:$0xff] }
  0x41   : > { %2574 = vmatprep.subr.mxu1 %v344_v32  ;;  %2531 = vmatpush3.msra.mxu0 %v2065_v31  ;;  %v3655_v26 = vld [vmem:[%s3376_s26 + $0x31] sm:$0xff]  ;;  %v2141_v30 = vld [vmem:[%s4189_s1 + $0x260] sm:$0xff] }
  0x42   : > { %2532 = vmatprep.mubr.f32.mxu0 %v2057_v33  ;;  %2575 = vmatpush3.msra.mxu1 %v344_v32  ;;  %v2100_v31 = vld [vmem:[%s3376_s26 + $0x150] sm:$0xff]  ;;  %v1030_v32 = vld [vmem:[%s4190_s2 + $0x60] sm:$0xff] }
  0x43   : > { %2576 = vmatprep.mubr.f32.mxu1 %v336_v34  ;;  %2533 = vmatmul.mubr.f32.vlgmr.msra.gmra.mxu0 %v3481_v35  ;;  %v3674_v33 = vld [vmem:[%s3376_s26 + $0x41] sm:$0xff]  ;;  %v3677_v34 = vld [vmem:[%s3376_s26 + $0x51] sm:$0xff] }
  0x44   : > { %2577 = vmatmul.mubr.f32.vlgmr.msra.gmra.mxu1 %v3484_v36  ;;  %2588 = vmatprep.subr.mxu0 %v2096_v37 }
  0x45   : > { %2632 = vmatprep.subr.mxu1 %v2120_v38  ;;  %2589 = vmatpush3.msra.mxu0 %v2096_v37  ;;  %v2140_v37 = vld [vmem:[%s4189_s1 + $0x258] sm:$0xff] }
  0x46   : > { %2633 = vmatpush3.msra.mxu1 %v2120_v38  ;;  %2590 = vmatprep.subr.mxu0 %v2095_v39  ;;  %v1029_v38 = vld [vmem:[%s4190_s2 + $0x58] sm:$0xff] }
  0x47   : > { %2634 = vmatprep.subr.mxu1 %v2119_v40  ;;  %2591 = vmatpush3.msra.mxu0 %v2095_v39  ;;  %v2101_v39 = vld [vmem:[%s3376_s26 + $0x160] sm:$0xff] }
  0x48   : > { %2635 = vmatpush3.msra.mxu1 %v2119_v40  ;;  %2592 = vmatprep.subr.mxu0 %v2094_v41  ;;  %v2139_v40 = vld [vmem:[%s4189_s1 + $0x250] sm:$0xff] }
  0x49   : > { %2636 = vmatprep.subr.mxu1 %v2118_v42  ;;  %2593 = vmatpush3.msra.mxu0 %v2094_v41  ;;  %v2102_v41 = vld [vmem:[%s3376_s26 + $0x170] sm:$0xff] }
  0x4a   : > { %2637 = vmatpush3.msra.mxu1 %v2118_v42  ;;  %2594 = vmatprep.subr.mxu0 %v2093_v43  ;;  %v1028_v42 = vld [vmem:[%s4190_s2 + $0x50] sm:$0xff] }
  0x4b   : > { %2638 = vmatprep.subr.mxu1 %v2117_v44  ;;  %2595 = vmatpush3.msra.mxu0 %v2093_v43  ;;  %v3696_v43 = vld [vmem:[%s3376_s26 + $0x61] sm:$0xff] }
  0x4c   : > { %2639 = vmatpush3.msra.mxu1 %v2117_v44  ;;  %2596 = vmatprep.subr.mxu0 %v2092_v45  ;;  %v3699_v44 = vld [vmem:[%s3376_s26 + $0x71] sm:$0xff] }
  0x4d   : > { %2640 = vmatprep.subr.mxu1 %v2116_v46  ;;  %2597 = vmatpush3.msra.mxu0 %v2092_v45  ;;  %v2138_v45 = vld [vmem:[%s4189_s1 + $0x248] sm:$0xff] }
  0x4e   : > { %2641 = vmatpush3.msra.mxu1 %v2116_v46  ;;  %2598 = vmatprep.subr.mxu0 %v2091_v47  ;;  %v1027_v46 = vld [vmem:[%s4190_s2 + $0x48] sm:$0xff] }
  0x4f   : > { %2642 = vmatprep.subr.mxu1 %v2115_v48  ;;  %2599 = vmatpush3.msra.mxu0 %v2091_v47  ;;  %v2103_v47 = vld [vmem:[%s3376_s26 + $0x180] sm:$0xff] }
  0x50   : > { %2643 = vmatpush3.msra.mxu1 %v2115_v48  ;;  %2600 = vmatprep.subr.mxu0 %v2090_v49  ;;  %v2137_v48 = vld [vmem:[%s4189_s1 + $0x240] sm:$0xff] }
  0x51   : > { %2644 = vmatprep.subr.mxu1 %v2114_v50  ;;  %2601 = vmatpush3.msra.mxu0 %v2090_v49  ;;  %v2104_v49 = vld [vmem:[%s3376_s26 + $0x190] sm:$0xff] }
  0x52   : > { %2645 = vmatpush3.msra.mxu1 %v2114_v50  ;;  %2602 = vmatprep.subr.mxu0 %v2089_v51  ;;  %v1026_v50 = vld [vmem:[%s4190_s2 + $0x40] sm:$0xff] }
  0x53   : > { %2646 = vmatprep.subr.mxu1 %v2113_v52  ;;  %2603 = vmatpush3.msra.mxu0 %v2089_v51  ;;  %v2136_v51 = vld [vmem:[%s4189_s1 + $0x238] sm:$0xff] }
  0x54   : > { %2647 = vmatpush3.msra.mxu1 %v2113_v52  ;;  %2604 = vmatprep.subr.mxu0 %v2088_v53  ;;  %v1025_v52 = vld [vmem:[%s4190_s2 + $0x38] sm:$0xff] }
  0x55   : > { %2648 = vmatprep.subr.mxu1 %v2112_v54  ;;  %2605 = vmatpush3.msra.mxu0 %v2088_v53  ;;  %v2135_v53 = vld [vmem:[%s4189_s1 + $0x230] sm:$0xff] }
  0x56   : > { %2649 = vmatpush3.msra.mxu1 %v2112_v54  ;;  %2535 = vmatprep.mubr.f32.mxu0 %v3543_v55  ;;  %v1024_v54 = vld [vmem:[%s4190_s2 + $0x30] sm:$0xff] }
  0x57   : > { %2579 = vmatprep.mubr.f32.mxu1 %v3546_v56  ;;  %2606 = vmatprep.subr.mxu0 %v2087_v57 }
  0x58   : > { %2650 = vmatprep.subr.mxu1 %v2111_v58  ;;  %2536 = vmatmul.mubr.f32.gmra.mxu0 %v3555_v59 }
  0x59   : > { %2580 = vmatmul.mubr.f32.gmra.mxu1 %v3558_v60  ;;  %2607 = vmatpush3.msra.mxu0 %v2087_v57  ;;  %v2134_v57 = vld [vmem:[%s4189_s1 + $0x228] sm:$0xff] }
  0x5a   : > { %2651 = vmatpush3.msra.mxu1 %v2111_v58  ;;  %2608 = vmatprep.subr.mxu0 %v2086_v61  ;;  %v1023_v58 = vld [vmem:[%s4190_s2 + $0x28] sm:$0xff] }
  0x5b   : > { %2652 = vmatprep.subr.mxu1 %v2110_v62  ;;  %2609 = vmatpush3.msra.mxu0 %v2086_v61  ;;  %v2133_v61 = vld [vmem:[%s4189_s1 + $0x220] sm:$0xff] }
  0x5c   : > { %2653 = vmatpush3.msra.mxu1 %v2110_v62  ;;  %2538 = vmatprep.mubr.f32.mxu0 %v3571_v63  ;;  %v1022_v62 = vld [vmem:[%s4190_s2 + $0x20] sm:$0xff] }
  0x5d   : > { %2582 = vmatprep.mubr.f32.mxu1 %v3574_v0  ;;  %2610 = vmatprep.subr.mxu0 %v2085_v1 }
  0x5e   : > { %2654 = vmatprep.subr.mxu1 %v2109_v2  ;;  %2539 = vmatmul.mubr.f32.gmra.mxu0 %v3583_v3 }
  0x5f   : > { %2583 = vmatmul.mubr.f32.gmra.mxu1 %v3586_v4  ;;  %2611 = vmatpush3.msra.mxu0 %v2085_v1  ;;  %v2132_v1 = vld [vmem:[%s4189_s1 + $0x218] sm:$0xff] }
  0x60   : > { %2655 = vmatpush3.msra.mxu1 %v2109_v2  ;;  %2612 = vmatprep.subr.mxu0 %v2084_v5  ;;  %v1021_v2 = vld [vmem:[%s4190_s2 + $0x18] sm:$0xff] }
  0x61   : > { %2656 = vmatprep.subr.mxu1 %v2108_v6  ;;  %2613 = vmatpush3.msra.mxu0 %v2084_v5  ;;  %v2131_v5 = vld [vmem:[%s4189_s1 + $0x210] sm:$0xff] }
  0x62   : > { %2657 = vmatpush3.msra.mxu1 %v2108_v6  ;;  %2541 = vmatprep.mubr.f32.mxu0 %v3599_v7  ;;  %v1020_v6 = vld [vmem:[%s4190_s2 + $0x10] sm:$0xff] }
  0x63   : > { %2585 = vmatprep.mubr.f32.mxu1 %v3602_v8  ;;  %2614 = vmatprep.subr.mxu0 %v2083_v9 }
  0x64   : > { %2658 = vmatprep.subr.mxu1 %v2107_v10  ;;  %2542 = vmatmul.mubr.f32.gmra.mxu0 %v3611_v11 }
  0x65   : > { %2586 = vmatmul.mubr.f32.gmra.mxu1 %v3614_v12  ;;  %2615 = vmatpush3.msra.mxu0 %v2083_v9  ;;  %v2130_v9 = vld [vmem:[%s4189_s1 + $0x208] sm:$0xff] }
  0x66   : > { %2659 = vmatpush3.msra.mxu1 %v2107_v10  ;;  %2616 = vmatprep.subr.mxu0 %v2082_v13  ;;  %v1019_v10 = vld [vmem:[%s4190_s2 + $0x8] sm:$0xff] }
  0x67   : > { %2660 = vmatprep.subr.mxu1 %v2106_v14  ;;  %2617 = vmatpush3.msra.mxu0 %v2082_v13  ;;  %v2129_v13 = vld [vmem:[%s4189_s1 + $0x200] sm:$0xff] }
  0x68   : > { %2661 = vmatpush3.msra.mxu1 %v2106_v14  ;;  %2618 = vmatprep.subr.mxu0 %v2081_v15  ;;  %v1018_v14 = vld [vmem:[%s4190_s2] sm:$0xff] }
  0x69   : > { %2662 = vmatprep.subr.mxu1 %v2105_v16  ;;  %2619 = vmatpush3.msra.mxu0 %v2081_v15  ;;  %v2121_v15 = vld [vmem:[%s3376_s26 + $0x1b0] sm:$0xff] }
  0x6a   : > { %2620 = vmatprep.mubr.f32.mxu0 %v598_v17  ;;  %2663 = vmatpush3.msra.mxu1 %v2105_v16  ;;  %v2122_v16 = vld [vmem:[%s3376_s26 + $0x1c0] sm:$0xff]  ;;  %v2168_v17 = vld [vmem:[%s4189_s1 + $0x2f8] sm:$0xff] }
  0x6b   : > { %2621 = vmatmul.mubr.f32.vlgmr.msra.gmra.mxu0 %v3634_v18  ;;  %2664 = vmatprep.mubr.f32.mxu1 %v2097_v19  ;;  %v2192_v19 = vld [vmem:[%s4189_s1 + $0x378] sm:$0xff] }
  0x6c   : > { %2676 = vmatprep.subr.mxu0 %v2144_v20  ;;  %2720 = vmatprep.subr.mxu1 %v1033_v21 }
  0x6d   : > { %2665 = vmatmul.mubr.f32.vlgmr.msra.gmra.mxu1 %v2098_v22  ;;  %2677 = vmatpush3.msra.mxu0 %v2144_v20  ;;  %v2167_v20 = vld [vmem:[%s4189_s1 + $0x2f0] sm:$0xff] }
  0x6e   : > { %2721 = vmatpush3.msra.mxu1 %v1033_v21  ;;  %2678 = vmatprep.subr.mxu0 %v2143_v23  ;;  %v2191_v21 = vld [vmem:[%s4189_s1 + $0x370] sm:$0xff] }
  0x6f   : > { %2722 = vmatprep.subr.mxu1 %v1032_v24  ;;  %2623 = vmatprep.mubr.f32.mxu0 %v3652_v25  ;;  %v2123_v22 = vld [vmem:[%s3376_s26 + $0x1d0] sm:$0xff] }
  0x70   : > { %2679 = vmatpush3.msra.mxu0 %v2143_v23  ;;  %2723 = vmatpush3.msra.mxu1 %v1032_v24  ;;  %v2124_v23 = vld [vmem:[%s3376_s26 + $0x1e0] sm:$0xff]  ;;  %v2166_v24 = vld [vmem:[%s4189_s1 + $0x2e8] sm:$0xff] }
  0x71   : > { %2624 = vmatmul.mubr.f32.gmra.mxu0 %v3655_v26  ;;  %2680 = vmatprep.subr.mxu0 %v2142_v27 }
  0x72   : > { %2724 = vmatprep.subr.mxu1 %v1031_v28  ;;  %2667 = vmatprep.mubr.f32.mxu1 %v2099_v29  ;;  %v2189_v29 = vld [vmem:[%s4189_s1 + $0x360] sm:$0xff] }
  0x73   : > { %2681 = vmatpush3.msra.mxu0 %v2142_v27  ;;  %2725 = vmatpush3.msra.mxu1 %v1031_v28  ;;  %v2190_v27 = vld [vmem:[%s4189_s1 + $0x368] sm:$0xff]  ;;  %v2165_v28 = vld [vmem:[%s4189_s1 + $0x2e0] sm:$0xff] }
  0x74   : > { %2682 = vmatprep.subr.mxu0 %v2141_v30  ;;  %2668 = vmatmul.mubr.f32.gmra.mxu1 %v2100_v31  ;;  %v2126_v31 = vld [vmem:[%s3376_s26 + $0x200] sm:$0xff] }
  0x75   : > { %2726 = vmatprep.subr.mxu1 %v1030_v32  ;;  %2626 = vmatprep.mubr.f32.mxu0 %v3674_v33 }
  0x76   : > { %2683 = vmatpush3.msra.mxu0 %v2141_v30  ;;  %2727 = vmatpush3.msra.mxu1 %v1030_v32  ;;  %v2125_v30 = vld [vmem:[%s3376_s26 + $0x1f0] sm:$0xff]  ;;  %v2164_v32 = vld [vmem:[%s4189_s1 + $0x2d8] sm:$0xff] }
  0x77   : > { %2627 = vmatmul.mubr.f32.gmra.mxu0 %v3677_v34  ;;  %2684 = vmatprep.subr.mxu0 %v2140_v37 }
  0x78   : > { %2728 = vmatprep.subr.mxu1 %v1029_v38  ;;  %2670 = vmatprep.mubr.f32.mxu1 %v2101_v39  ;;  %v2187_v39 = vld [vmem:[%s4189_s1 + $0x350] sm:$0xff] }
  0x79   : > { %2685 = vmatpush3.msra.mxu0 %v2140_v37  ;;  %2729 = vmatpush3.msra.mxu1 %v1029_v38  ;;  %v2188_v37 = vld [vmem:[%s4189_s1 + $0x358] sm:$0xff]  ;;  %v2163_v38 = vld [vmem:[%s4189_s1 + $0x2d0] sm:$0xff] }
  0x7a   : > { %2686 = vmatprep.subr.mxu0 %v2139_v40  ;;  %2671 = vmatmul.mubr.f32.gmra.mxu1 %v2102_v41  ;;  %v2128_v41 = vld [vmem:[%s3376_s26 + $0x220] sm:$0xff] }
  0x7b   : > { %2730 = vmatprep.subr.mxu1 %v1028_v42  ;;  %2629 = vmatprep.mubr.f32.mxu0 %v3696_v43 }
  0x7c   : > { %2687 = vmatpush3.msra.mxu0 %v2139_v40  ;;  %2731 = vmatpush3.msra.mxu1 %v1028_v42  ;;  %v2127_v40 = vld [vmem:[%s3376_s26 + $0x210] sm:$0xff]  ;;  %v2162_v42 = vld [vmem:[%s4189_s1 + $0x2c8] sm:$0xff] }
  0x7d   : > { %2630 = vmatmul.mubr.f32.gmra.mxu0 %v3699_v44  ;;  %2688 = vmatprep.subr.mxu0 %v2138_v45 }
  0x7e   : > { %2732 = vmatprep.subr.mxu1 %v1027_v46  ;;  %2673 = vmatprep.mubr.f32.mxu1 %v2103_v47  ;;  %v2185_v47 = vld [vmem:[%s4189_s1 + $0x340] sm:$0xff] }
  0x7f   : > { %2689 = vmatpush3.msra.mxu0 %v2138_v45  ;;  %2733 = vmatpush3.msra.mxu1 %v1027_v46  ;;  %v2186_v45 = vld [vmem:[%s4189_s1 + $0x348] sm:$0xff]  ;;  %v2161_v46 = vld [vmem:[%s4189_s1 + $0x2c0] sm:$0xff] }
  0x80   : > { %2690 = vmatprep.subr.mxu0 %v2137_v48  ;;  %2674 = vmatmul.mubr.f32.gmra.mxu1 %v2104_v49  ;;  %v2184_v49 = vld [vmem:[%s4189_s1 + $0x338] sm:$0xff] }
  0x81   : > { %2734 = vmatprep.subr.mxu1 %v1026_v50  ;;  %2691 = vmatpush3.msra.mxu0 %v2137_v48  ;;  %v2160_v48 = vld [vmem:[%s4189_s1 + $0x2b8] sm:$0xff] }
  0x82   : > { %2735 = vmatpush3.msra.mxu1 %v1026_v50  ;;  %2692 = vmatprep.subr.mxu0 %v2136_v51  ;;  %v2159_v50 = vld [vmem:[%s4189_s1 + $0x2b0] sm:$0xff] }
  0x83   : > { %2736 = vmatprep.subr.mxu1 %v1025_v52  ;;  %2693 = vmatpush3.msra.mxu0 %v2136_v51  ;;  %v2183_v51 = vld [vmem:[%s4189_s1 + $0x330] sm:$0xff] }
  0x84   : > { %2737 = vmatpush3.msra.mxu1 %v1025_v52  ;;  %2694 = vmatprep.subr.mxu0 %v2135_v53  ;;  %v2158_v52 = vld [vmem:[%s4189_s1 + $0x2a8] sm:$0xff] }
  0x85   : > { %2738 = vmatprep.subr.mxu1 %v1024_v54  ;;  %2695 = vmatpush3.msra.mxu0 %v2135_v53  ;;  %v2182_v53 = vld [vmem:[%s4189_s1 + $0x328] sm:$0xff] }
  0x86   : > { %2739 = vmatpush3.msra.mxu1 %v1024_v54  ;;  %2696 = vmatprep.subr.mxu0 %v2134_v57  ;;  %v2157_v54 = vld [vmem:[%s4189_s1 + $0x2a0] sm:$0xff] }
  0x87   : > { %2740 = vmatprep.subr.mxu1 %v1023_v58  ;;  %2697 = vmatpush3.msra.mxu0 %v2134_v57  ;;  %v2181_v57 = vld [vmem:[%s4189_s1 + $0x320] sm:$0xff] }
  0x88   : > { %2741 = vmatpush3.msra.mxu1 %v1023_v58  ;;  %2698 = vmatprep.subr.mxu0 %v2133_v61  ;;  %v2156_v58 = vld [vmem:[%s4189_s1 + $0x298] sm:$0xff] }
  0x89   : > { %2742 = vmatprep.subr.mxu1 %v1022_v62  ;;  %2699 = vmatpush3.msra.mxu0 %v2133_v61  ;;  %v2180_v61 = vld [vmem:[%s4189_s1 + $0x318] sm:$0xff] }
  0x8a   : > { %2743 = vmatpush3.msra.mxu1 %v1022_v62  ;;  %2700 = vmatprep.subr.mxu0 %v2132_v1  ;;  %v2155_v62 = vld [vmem:[%s4189_s1 + $0x290] sm:$0xff] }
  0x8b   : > { %2744 = vmatprep.subr.mxu1 %v1021_v2  ;;  %2701 = vmatpush3.msra.mxu0 %v2132_v1  ;;  %v2179_v1 = vld [vmem:[%s4189_s1 + $0x310] sm:$0xff] }
  0x8c   : > { %2745 = vmatpush3.msra.mxu1 %v1021_v2  ;;  %2702 = vmatprep.subr.mxu0 %v2131_v5  ;;  %v2154_v2 = vld [vmem:[%s4189_s1 + $0x288] sm:$0xff] }
  0x8d   : > { %2746 = vmatprep.subr.mxu1 %v1020_v6  ;;  %2703 = vmatpush3.msra.mxu0 %v2131_v5  ;;  %v2178_v5 = vld [vmem:[%s4189_s1 + $0x308] sm:$0xff] }
  0x8e   : > { %2747 = vmatpush3.msra.mxu1 %v1020_v6  ;;  %2704 = vmatprep.subr.mxu0 %v2130_v9  ;;  %v2153_v6 = vld [vmem:[%s4189_s1 + $0x280] sm:$0xff] }
  0x8f   : > { %2748 = vmatprep.subr.mxu1 %v1019_v10  ;;  %2705 = vmatpush3.msra.mxu0 %v2130_v9  ;;  %v2177_v9 = vld [vmem:[%s4189_s1 + $0x300] sm:$0xff] }
  0x90   : > { %2749 = vmatpush3.msra.mxu1 %v1019_v10  ;;  %2706 = vmatprep.subr.mxu0 %v2129_v13  ;;  %v2145_v10 = vld [vmem:[%s3376_s26 + $0x121] sm:$0xff] }
  0x91   : > { %2750 = vmatprep.subr.mxu1 %v1018_v14  ;;  %2707 = vmatpush3.msra.mxu0 %v2129_v13  ;;  %v2146_v13 = vld [vmem:[%s3376_s26 + $0x131] sm:$0xff] }
  0x92   : > { %2708 = vmatprep.mubr.f32.mxu0 %v2121_v15  ;;  %2751 = vmatpush3.msra.mxu1 %v1018_v14  ;;  %v2216_v14 = vld [vmem:[%s4189_s1 + $0x3f8] sm:$0xff] }
  0x93   : > { %2752 = vmatprep.mubr.f32.mxu1 %v2121_v15  ;;  %2709 = vmatmul.mubr.f32.vlgmr.msra.gmra.mxu0 %v2122_v16  ;;  %v2240_v15 = vld [vmem:[%s4189_s1 + $0x478] sm:$0xff] }
  0x94   : > { %2753 = vmatmul.mubr.f32.vlgmr.msra.gmra.mxu1 %v2122_v16  ;;  %2764 = vmatprep.subr.mxu0 %v2168_v17  ;;  %v2215_v16 = vld [vmem:[%s4189_s1 + $0x3f0] sm:$0xff] }
  0x95   : > { %2808 = vmatprep.subr.mxu1 %v2192_v19  ;;  %2765 = vmatpush3.msra.mxu0 %v2168_v17  ;;  %v2239_v17 = vld [vmem:[%s4189_s1 + $0x470] sm:$0xff] }
  0x96   : > { %2809 = vmatpush3.msra.mxu1 %v2192_v19  ;;  %2766 = vmatprep.subr.mxu0 %v2167_v20  ;;  %v2147_v19 = vld [vmem:[%s3376_s26 + $0x141] sm:$0xff] }
  0x97   : > { %2810 = vmatprep.subr.mxu1 %v2191_v21  ;;  %2711 = vmatprep.mubr.f32.mxu0 %v2123_v22 }
  0x98   : > { %2755 = vmatprep.mubr.f32.mxu1 %v2123_v22  ;;  %2767 = vmatpush3.msra.mxu0 %v2167_v20  ;;  %v2148_v20 = vld [vmem:[%s3376_s26 + $0x151] sm:$0xff]  ;;  %v2237_v22 = vld [vmem:[%s4189_s1 + $0x460] sm:$0xff] }
  0x99   : > { %2811 = vmatpush3.msra.mxu1 %v2191_v21  ;;  %2712 = vmatmul.mubr.f32.gmra.mxu0 %v2124_v23  ;;  %v2238_v21 = vld [vmem:[%s4189_s1 + $0x468] sm:$0xff] }
  0x9a   : > { %2756 = vmatmul.mubr.f32.gmra.mxu1 %v2124_v23  ;;  %2768 = vmatprep.subr.mxu0 %v2166_v24  ;;  %v2149_v23 = vld [vmem:[%s3376_s26 + $0x161] sm:$0xff] }
  0x9b   : > { %2812 = vmatprep.subr.mxu1 %v2190_v27  ;;  %2769 = vmatpush3.msra.mxu0 %v2166_v24  ;;  %v2150_v24 = vld [vmem:[%s3376_s26 + $0x171] sm:$0xff] }
  0x9c   : > { %2813 = vmatpush3.msra.mxu1 %v2190_v27  ;;  %2770 = vmatprep.subr.mxu0 %v2165_v28  ;;  %v2212_v27 = vld [vmem:[%s4189_s1 + $0x3d8] sm:$0xff] }
  0x9d   : > { %2814 = vmatprep.subr.mxu1 %v2189_v29  ;;  %2714 = vmatprep.mubr.f32.mxu0 %v2125_v30 }
  0x9e   : > { %2758 = vmatprep.mubr.f32.mxu1 %v2125_v30  ;;  %2771 = vmatpush3.msra.mxu0 %v2165_v28  ;;  %v2236_v28 = vld [vmem:[%s4189_s1 + $0x458] sm:$0xff] }
  0x9f   : > { %2815 = vmatpush3.msra.mxu1 %v2189_v29  ;;  %2715 = vmatmul.mubr.f32.gmra.mxu0 %v2126_v31  ;;  %v2151_v29 = vld [vmem:[%s3376_s26 + $0x181] sm:$0xff]  ;;  %v2152_v30 = vld [vmem:[%s3376_s26 + $0x191] sm:$0xff] }
  0xa0   : > { %2759 = vmatmul.mubr.f32.gmra.mxu1 %v2126_v31  ;;  %2772 = vmatprep.subr.mxu0 %v2164_v32  ;;  %v2210_v31 = vld [vmem:[%s4189_s1 + $0x3c8] sm:$0xff] }
  0xa1   : > { %2816 = vmatprep.subr.mxu1 %v2188_v37  ;;  %2773 = vmatpush3.msra.mxu0 %v2164_v32  ;;  %v2234_v32 = vld [vmem:[%s4189_s1 + $0x448] sm:$0xff] }
  0xa2   : > { %2817 = vmatpush3.msra.mxu1 %v2188_v37  ;;  %2774 = vmatprep.subr.mxu0 %v2163_v38  ;;  %v2233_v37 = vld [vmem:[%s4189_s1 + $0x440] sm:$0xff] }
  0xa3   : > { %2818 = vmatprep.subr.mxu1 %v2187_v39  ;;  %2717 = vmatprep.mubr.f32.mxu0 %v2127_v40 }
  0xa4   : > { %2761 = vmatprep.mubr.f32.mxu1 %v2127_v40  ;;  %2775 = vmatpush3.msra.mxu0 %v2163_v38  ;;  %v2208_v38 = vld [vmem:[%s4189_s1 + $0x3b8] sm:$0xff]  ;;  %v2207_v40 = vld [vmem:[%s4189_s1 + $0x3b0] sm:$0xff] }
  0xa5   : > { %2819 = vmatpush3.msra.mxu1 %v2187_v39  ;;  %2718 = vmatmul.mubr.f32.gmra.mxu0 %v2128_v41  ;;  %v2232_v39 = vld [vmem:[%s4189_s1 + $0x438] sm:$0xff] }
  0xa6   : > { %2762 = vmatmul.mubr.f32.gmra.mxu1 %v2128_v41  ;;  %2776 = vmatprep.subr.mxu0 %v2162_v42  ;;  %v2206_v41 = vld [vmem:[%s4189_s1 + $0x3a8] sm:$0xff] }
  0xa7   : > { %2820 = vmatprep.subr.mxu1 %v2186_v45  ;;  %2777 = vmatpush3.msra.mxu0 %v2162_v42  ;;  %v2230_v42 = vld [vmem:[%s4189_s1 + $0x428] sm:$0xff] }
  0xa8   : > { %2821 = vmatpush3.msra.mxu1 %v2186_v45  ;;  %2778 = vmatprep.subr.mxu0 %v2161_v46  ;;  %v2205_v45 = vld [vmem:[%s4189_s1 + $0x3a0] sm:$0xff] }
  0xa9   : > { %2822 = vmatprep.subr.mxu1 %v2185_v47  ;;  %2779 = vmatpush3.msra.mxu0 %v2161_v46  ;;  %v2229_v46 = vld [vmem:[%s4189_s1 + $0x420] sm:$0xff] }
  0xaa   : > { %2823 = vmatpush3.msra.mxu1 %v2185_v47  ;;  %2780 = vmatprep.subr.mxu0 %v2160_v48  ;;  %v2204_v47 = vld [vmem:[%s4189_s1 + $0x398] sm:$0xff] }
  0xab   : > { %2824 = vmatprep.subr.mxu1 %v2184_v49  ;;  %2781 = vmatpush3.msra.mxu0 %v2160_v48  ;;  %v2228_v48 = vld [vmem:[%s4189_s1 + $0x418] sm:$0xff] }
  0xac   : > { %2825 = vmatpush3.msra.mxu1 %v2184_v49  ;;  %2782 = vmatprep.subr.mxu0 %v2159_v50  ;;  %v2203_v49 = vld [vmem:[%s4189_s1 + $0x390] sm:$0xff] }
  0xad   : > { %2826 = vmatprep.subr.mxu1 %v2183_v51  ;;  %2783 = vmatpush3.msra.mxu0 %v2159_v50  ;;  %v2227_v50 = vld [vmem:[%s4189_s1 + $0x410] sm:$0xff] }
  0xae   : > { %2827 = vmatpush3.msra.mxu1 %v2183_v51  ;;  %2784 = vmatprep.subr.mxu0 %v2158_v52  ;;  %v2202_v51 = vld [vmem:[%s4189_s1 + $0x388] sm:$0xff] }
  0xaf   : > { %2828 = vmatprep.subr.mxu1 %v2182_v53  ;;  %2785 = vmatpush3.msra.mxu0 %v2158_v52  ;;  %v2226_v52 = vld [vmem:[%s4189_s1 + $0x408] sm:$0xff] }
  0xb0   : > { %2829 = vmatpush3.msra.mxu1 %v2182_v53  ;;  %2786 = vmatprep.subr.mxu0 %v2157_v54  ;;  %v2201_v53 = vld [vmem:[%s4189_s1 + $0x380] sm:$0xff] }
  0xb1   : > { %2830 = vmatprep.subr.mxu1 %v2181_v57  ;;  %2787 = vmatpush3.msra.mxu0 %v2157_v54  ;;  %v2225_v54 = vld [vmem:[%s4189_s1 + $0x400] sm:$0xff] }
  0xb2   : > { %2831 = vmatpush3.msra.mxu1 %v2181_v57  ;;  %2788 = vmatprep.subr.mxu0 %v2156_v58 }
  0xb3   : > { %2832 = vmatprep.subr.mxu1 %v2180_v61  ;;  %2789 = vmatpush3.msra.mxu0 %v2156_v58 }
  0xb4   : > { %2833 = vmatpush3.msra.mxu1 %v2180_v61  ;;  %2790 = vmatprep.subr.mxu0 %v2155_v62 }
  0xb5   : > { %2834 = vmatprep.subr.mxu1 %v2179_v1  ;;  %2791 = vmatpush3.msra.mxu0 %v2155_v62 }
  0xb6   : > { %2835 = vmatpush3.msra.mxu1 %v2179_v1  ;;  %2792 = vmatprep.subr.mxu0 %v2154_v2 }
  0xb7   : > { %2836 = vmatprep.subr.mxu1 %v2178_v5  ;;  %2793 = vmatpush3.msra.mxu0 %v2154_v2 }
  0xb8   : > { %2837 = vmatpush3.msra.mxu1 %v2178_v5  ;;  %2794 = vmatprep.subr.mxu0 %v2153_v6 }
  0xb9   : > { %2838 = vmatprep.subr.mxu1 %v2177_v9  ;;  %2795 = vmatpush3.msra.mxu0 %v2153_v6 }
  0xba   : > { %2796 = vmatprep.mubr.f32.mxu0 %v2145_v10  ;;  %2839 = vmatpush3.msra.mxu1 %v2177_v9 }
  0xbb   : > { %2797 = vmatmul.mubr.f32.vlgmr.msra.gmra.mxu0 %v2146_v13  ;;  %2840 = vmatprep.mubr.f32.mxu1 %v3484_v36  ;;  %v2214_v36 = vld [vmem:[%s4189_s1 + $0x3e8] sm:$0xff] }
  0xbc   : > { %2852 = vmatprep.subr.mxu0 %v2216_v14  ;;  %2896 = vmatprep.subr.mxu1 %v2240_v15 }
  0xbd   : > { %2841 = vmatmul.mubr.f32.vlgmr.msra.gmra.mxu1 %v3546_v56  ;;  %2853 = vmatpush3.msra.mxu0 %v2216_v14  ;;  %v2213_v56 = vld [vmem:[%s4189_s1 + $0x3e0] sm:$0xff] }
  0xbe   : > { %2897 = vmatpush3.msra.mxu1 %v2240_v15  ;;  %2854 = vmatprep.subr.mxu0 %v2215_v16 }
  0xbf   : > { %2898 = vmatprep.subr.mxu1 %v2239_v17  ;;  %2799 = vmatprep.mubr.f32.mxu0 %v2147_v19 }
  0xc0   : > { %2855 = vmatpush3.msra.mxu0 %v2215_v16  ;;  %2899 = vmatpush3.msra.mxu1 %v2239_v17 }
  0xc1   : > { %2800 = vmatmul.mubr.f32.gmra.mxu0 %v2148_v20  ;;  %2856 = vmatprep.subr.mxu0 %v2214_v36 }
  0xc2   : > { %2900 = vmatprep.subr.mxu1 %v2238_v21  ;;  %2843 = vmatprep.mubr.f32.mxu1 %v3558_v60  ;;  %v2211_v60 = vld [vmem:[%s4189_s1 + $0x3d0] sm:$0xff] }
  0xc3   : > { %2857 = vmatpush3.msra.mxu0 %v2214_v36  ;;  %2901 = vmatpush3.msra.mxu1 %v2238_v21 }
  0xc4   : > { %2858 = vmatprep.subr.mxu0 %v2213_v56  ;;  %2844 = vmatmul.mubr.f32.gmra.mxu1 %v3574_v0  ;;  %v2235_v0 = vld [vmem:[%s4189_s1 + $0x450] sm:$0xff] }
  0xc5   : > { %2902 = vmatprep.subr.mxu1 %v2237_v22  ;;  %2802 = vmatprep.mubr.f32.mxu0 %v2149_v23 }
  0xc6   : > { %2859 = vmatpush3.msra.mxu0 %v2213_v56  ;;  %2903 = vmatpush3.msra.mxu1 %v2237_v22 }
  0xc7   : > { %2803 = vmatmul.mubr.f32.gmra.mxu0 %v2150_v24  ;;  %2860 = vmatprep.subr.mxu0 %v2212_v27 }
  0xc8   : > { %2904 = vmatprep.subr.mxu1 %v2236_v28  ;;  %2846 = vmatprep.mubr.f32.mxu1 %v3586_v4  ;;  %v2209_v4 = vld [vmem:[%s4189_s1 + $0x3c0] sm:$0xff] }
  0xc9   : > { %2861 = vmatpush3.msra.mxu0 %v2212_v27  ;;  %2905 = vmatpush3.msra.mxu1 %v2236_v28 }
  0xca   : > { %2862 = vmatprep.subr.mxu0 %v2211_v60  ;;  %2847 = vmatmul.mubr.f32.gmra.mxu1 %v3602_v8  ;;  %v2176_v8 = vld [vmem:[%s3376_s26 + $0x80] sm:$0xff] }
  0xcb   : > { %2906 = vmatprep.subr.mxu1 %v2235_v0  ;;  %2805 = vmatprep.mubr.f32.mxu0 %v2151_v29 }
  0xcc   : > { %2863 = vmatpush3.msra.mxu0 %v2211_v60  ;;  %2907 = vmatpush3.msra.mxu1 %v2235_v0 }
  0xcd   : > { %2806 = vmatmul.mubr.f32.gmra.mxu0 %v2152_v30  ;;  %2864 = vmatprep.subr.mxu0 %v2210_v31 }
  0xce   : > { %2908 = vmatprep.subr.mxu1 %v2234_v32  ;;  %2849 = vmatprep.mubr.f32.mxu1 %v3614_v12  ;;  %v2231_v12 = vld [vmem:[%s4189_s1 + $0x430] sm:$0xff] }
  0xcf   : > { %2865 = vmatpush3.msra.mxu0 %v2210_v31  ;;  %2909 = vmatpush3.msra.mxu1 %v2234_v32 }
  0xd0   : > { %2866 = vmatprep.subr.mxu0 %v2209_v4  ;;  %2850 = vmatmul.mubr.f32.gmra.mxu1 %v2176_v8 }
  0xd1   : > { %2910 = vmatprep.subr.mxu1 %v2233_v37  ;;  %2867 = vmatpush3.msra.mxu0 %v2209_v4 }
  0xd2   : > { %2911 = vmatpush3.msra.mxu1 %v2233_v37  ;;  %2868 = vmatprep.subr.mxu0 %v2208_v38 }
  0xd3   : > { %2912 = vmatprep.subr.mxu1 %v2232_v39  ;;  %2869 = vmatpush3.msra.mxu0 %v2208_v38 }
  0xd4   : > { %2913 = vmatpush3.msra.mxu1 %v2232_v39  ;;  %2870 = vmatprep.subr.mxu0 %v2207_v40 }
  0xd5   : > { %2914 = vmatprep.subr.mxu1 %v2231_v12  ;;  %2871 = vmatpush3.msra.mxu0 %v2207_v40 }
  0xd6   : > { %2915 = vmatpush3.msra.mxu1 %v2231_v12  ;;  %2872 = vmatprep.subr.mxu0 %v2206_v41 }
  0xd7   : > { %2916 = vmatprep.subr.mxu1 %v2230_v42  ;;  %2873 = vmatpush3.msra.mxu0 %v2206_v41 }
  0xd8   : > { %2917 = vmatpush3.msra.mxu1 %v2230_v42  ;;  %2874 = vmatprep.subr.mxu0 %v2205_v45 }
  0xd9   : > { %2918 = vmatprep.subr.mxu1 %v2229_v46  ;;  %2875 = vmatpush3.msra.mxu0 %v2205_v45 }
  0xda   : > { %2919 = vmatpush3.msra.mxu1 %v2229_v46  ;;  %2876 = vmatprep.subr.mxu0 %v2204_v47 }
  0xdb   : > { %2920 = vmatprep.subr.mxu1 %v2228_v48  ;;  %2877 = vmatpush3.msra.mxu0 %v2204_v47 }
  0xdc   : > { %2921 = vmatpush3.msra.mxu1 %v2228_v48  ;;  %2878 = vmatprep.subr.mxu0 %v2203_v49 }
  0xdd   : > { %2922 = vmatprep.subr.mxu1 %v2227_v50  ;;  %2879 = vmatpush3.msra.mxu0 %v2203_v49 }
  0xde   : > { %2923 = vmatpush3.msra.mxu1 %v2227_v50  ;;  %2880 = vmatprep.subr.mxu0 %v2202_v51 }
  0xdf   : > { %2924 = vmatprep.subr.mxu1 %v2226_v52  ;;  %2881 = vmatpush3.msra.mxu0 %v2202_v51 }
  0xe0   : > { %2925 = vmatpush3.msra.mxu1 %v2226_v52  ;;  %2882 = vmatprep.subr.mxu0 %v2201_v53 }
  0xe1   : > { %2926 = vmatprep.subr.mxu1 %v2225_v54  ;;  %2883 = vmatpush3.msra.mxu0 %v2201_v53 }
  0xe2   : > { %2884 = vmatprep.mubr.f32.mxu0 %v3481_v35  ;;  %2927 = vmatpush3.msra.mxu1 %v2225_v54  ;;  %v2200_v35 = vld [vmem:[%s3376_s26 + $0x110] sm:$0xff] }
  0xe3   : > { %2928 = vmatprep.mubr.f32.mxu1 %v3634_v18  ;;  %2885 = vmatmul.mubr.f32.vlgmr.msra.gmra.mxu0 %v3543_v55  ;;  %v2224_v55 = vld [vmem:[%s3376_s26 + $0x81] sm:$0xff]  ;;  %s4208_s26 = sadd.s32 4294967295, %s3246_s10  }
  0xe4   : > { %2929 = vmatmul.mubr.f32.vlgmr.msra.gmra.mxu1 %v3652_v25  ;;  %2887 = vmatprep.mubr.f32.mxu0 %v3555_v59  ;;  %s4020_s12 = sand.u32 1, %s4208_s26   ;;  %s3038_s26 = scalar_lea.vmem %s3037_s25, 2048 }
  0xe5   : > { %2931 = vmatprep.mubr.f32.mxu1 %v3655_v26  ;;  %p3040_p5 = scmp.lt.s32.totalorder %s3038_s26, %s3032_s13 }
  0xe7   : > { %2888 = vmatmul.mubr.f32.gmra.mxu0 %v3571_v63  ;;  %p3041_p6 = por %p3040_p5, %p3039_p3 }
  0xe8   : > { %2932 = vmatmul.mubr.f32.gmra.mxu1 %v3674_v33  ;;  %2890 = vmatprep.mubr.f32.mxu0 %v3583_v3 }
  0xe9   : > { %2934 = vmatprep.mubr.f32.mxu1 %v3677_v34  ;;  %p3042_p7 = pnand %p3041_p6, %p3035_p1 }
  0xeb   : > { %2891 = vmatmul.mubr.f32.gmra.mxu0 %v3599_v7 }
  0xec   : > { %2935 = vmatmul.mubr.f32.gmra.mxu1 %v3696_v43  ;;  %2893 = vmatprep.mubr.f32.mxu0 %v3611_v11 }
  0xed   : > { %2937 = vmatprep.mubr.f32.mxu1 %v3699_v44 }
  0xef   : > { %2894 = vmatmul.mubr.f32.gmra.mxu0 %v2200_v35 }
  0xf0   : > { %2938 = vmatmul.mubr.f32.gmra.mxu1 %v2224_v55 }
 0x103   : > { %v2534_v59 = vpop.f32.mrf.mxu0 }
 0x104   : > { %v2578_v63 = vpop.f32.mrf.mxu1 }
 0x105   : > { %v454_v18 = vpop.f32.mrf.mxu0  ;;  %v565_v44 = vadd.f32 %v2578_v63, %v2534_v59 }
 0x106   : > { %v559_v25 = vpop.f32.mrf.mxu1 }
 0x107   : > { %v560_v5 = vadd.f32 %v559_v25, %v454_v18 }
 0x118   : > { %v2537_v26 = vpop.f32.mrf.mxu0 }
 0x119   : > { %v2581_v3 = vpop.f32.mrf.mxu1 }
 0x11a   : > { %v464_v33 = vpop.f32.mrf.mxu0  ;;  %v575_v16 = vadd.f32 %v2581_v3, %v2537_v26 }
 0x11b   : > { %v569_v34 = vpop.f32.mrf.mxu1 }
 0x11c   : > { %v570_v20 = vadd.f32 %v569_v34, %v464_v33 }
 0x11e   : > { %v2540_v57 = vpop.f32.mrf.mxu0 }
 0x11f   : > { %v2584_v7 = vpop.f32.mrf.mxu1 }
 0x120   : > { %v474_v58 = vpop.f32.mrf.mxu0  ;;  %v585_v23 = vadd.f32 %v2584_v7, %v2540_v57 }
 0x121   : > { %v579_v43 = vpop.f32.mrf.mxu1 }
 0x122   : > { %v580_v60 = vadd.f32 %v579_v43, %v474_v58 }
 0x124   : > { %v2543_v61 = vpop.f32.mrf.mxu0 }
 0x125   : > { %v2587_v11 = vpop.f32.mrf.mxu1 }
 0x126   : > { %v484_v62 = vpop.f32.mrf.mxu0  ;;  %v595_v4 = vadd.f32 %v2587_v11, %v2543_v61 }
 0x127   : > { %v589_v1 = vpop.f32.mrf.mxu1 }
 0x128   : > { %v590_v39 = vadd.f32 %v589_v1, %v484_v62 }
 0x12b   : > { %v2622_v2 = vpop.f32.mrf.mxu0 }
 0x12c   : > { %v729_v6 = vadd.f32 %v2622_v2, %v565_v44 }
 0x12d   : > { %v2666_v9 = vpop.f32.mrf.mxu1  ;;  %v689_v10 = vpop.f32.mrf.mxu0 }
 0x12e   : > { %v3997_v13 = vadd.f32 %v2666_v9, %v729_v6  ;;  %v728_v14 = vadd.f32 %v689_v10, %v560_v5 }
 0x12f   : > { %v830_v15 = vpop.f32.mrf.mxu1 }
 0x130   : > { %v3999_v17 = vadd.f32 %v830_v15, %v728_v14 }
 0x131   : > { %v2625_v19 = vpop.f32.mrf.mxu0 }
 0x132   : > { %v731_v36 = vadd.f32 %v2625_v19, %v575_v16 }
 0x133   : > { %v699_v21 = vpop.f32.mrf.mxu0 }
 0x134   : > { %v730_v56 = vadd.f32 %v699_v21, %v570_v20  ;;  %v2669_v22 = vpop.f32.mrf.mxu1 }
 0x135   : > { %v4001_v24 = vadd.f32 %v2669_v22, %v731_v36 }
 0x136   : > { %v840_v28 = vpop.f32.mrf.mxu1 }
 0x137   : > { %v2628_v27 = vpop.f32.mrf.mxu0  ;;  %v4003_v29 = vadd.f32 %v840_v28, %v730_v56 }
 0x138   : > { %v733_v0 = vadd.f32 %v2628_v27, %v585_v23 }
 0x139   : > { %v709_v30 = vpop.f32.mrf.mxu0 }
 0x13a   : > { %v732_v31 = vadd.f32 %v709_v30, %v580_v60  ;;  %v2672_v32 = vpop.f32.mrf.mxu1 }
 0x13b   : > { %v4005_v8 = vadd.f32 %v2672_v32, %v733_v0 }
 0x13c   : > { %v850_v38 = vpop.f32.mrf.mxu1 }
 0x13d   : > { %v2631_v37 = vpop.f32.mrf.mxu0  ;;  %v4007_v12 = vadd.f32 %v850_v38, %v732_v31 }
 0x13e   : > { %v735_v40 = vadd.f32 %v2631_v37, %v595_v4 }
 0x13f   : > { %v719_v41 = vpop.f32.mrf.mxu0 }
 0x140   : > { %v734_v42 = vadd.f32 %v719_v41, %v590_v39  ;;  %v2675_v45 = vpop.f32.mrf.mxu1 }
 0x141   : > { %v4009_v46 = vadd.f32 %v2675_v45, %v735_v40 }
 0x142   : > { %v860_v47 = vpop.f32.mrf.mxu1 }
 0x143   : > { %v4011_v48 = vadd.f32 %v860_v47, %v734_v42 }
 0x153   : > { %v4035_v44 = vpop.f32.mrf.mxu0 }
 0x154   : > { %v2754_v49 = vpop.f32.mrf.mxu1 }
 0x155   : > { %1140 = vst [vmem:[%s3380_s17 + $0x8] sm:$0xff] %v2754_v49  ;;  %v1165_v51 = vmul.f32 %v2754_v49, %v2754_v49 }
 0x156   : > { %v1100_v50 = vpop.f32.mrf.mxu1 }
 0x157   : > { %1139 = vst [vmem:[%s3380_s17] sm:$0xff] %v1100_v50  ;;  %v1164_v52 = vmul.f32 %v1100_v50, %v1100_v50  ;;  %v1148_v53 = vadd.f32 %v2754_v49, %v1100_v50 }
 0x159   : > { %v1172_v35 = vadd.f32 %v1165_v51, %v1164_v52 }
 0x15a   : > { %v2757_v54 = vpop.f32.mrf.mxu1 }
 0x15b   : > { %1142 = vst [vmem:[%s3380_s17 + $0x18] sm:$0xff] %v2757_v54  ;;  %v1167_v59 = vmul.f32 %v2757_v54, %v2757_v54 }
 0x15c   : > { %v1110_v55 = vpop.f32.mrf.mxu1 }
 0x15d   : > { %1141 = vst [vmem:[%s3380_s17 + $0x10] sm:$0xff] %v1110_v55  ;;  %v1149_v63 = vadd.f32 %v1148_v53, %v1110_v55  ;;  %v1166_v18 = vmul.f32 %v1110_v55, %v1110_v55 }
 0x15f   : > { %v1173_v25 = vadd.f32 %v1172_v35, %v1166_v18  ;;  %v1150_v26 = vadd.f32 %v2757_v54, %v1149_v63 }
 0x160   : > { %v2760_v3 = vpop.f32.mrf.mxu1 }
 0x161   : > { %1144 = vst [vmem:[%s3380_s17 + $0x28] sm:$0xff] %v2760_v3  ;;  %v1174_v33 = vadd.f32 %v1173_v25, %v1167_v59  ;;  %v1169_v57 = vmul.f32 %v2760_v3, %v2760_v3 }
 0x162   : > { %v1120_v34 = vpop.f32.mrf.mxu1 }
 0x163   : > { %1143 = vst [vmem:[%s3380_s17 + $0x20] sm:$0xff] %v1120_v34  ;;  %v1151_v7 = vadd.f32 %v1150_v26, %v1120_v34  ;;  %v1168_v58 = vmul.f32 %v1120_v34, %v1120_v34 }
 0x165   : > { %v1175_v43 = vadd.f32 %v1174_v33, %v1168_v58  ;;  %v1152_v61 = vadd.f32 %v2760_v3, %v1151_v7 }
 0x166   : > { %v2763_v11 = vpop.f32.mrf.mxu1 }
 0x167   : > { %1146 = vst [vmem:[%s3380_s17 + $0x38] sm:$0xff] %v2763_v11  ;;  %v1176_v62 = vadd.f32 %v1175_v43, %v1169_v57  ;;  %v1171_v2 = vmul.f32 %v2763_v11, %v2763_v11 }
 0x168   : > { %v1130_v1 = vpop.f32.mrf.mxu1 }
 0x169   : > { %1145 = vst [vmem:[%s3380_s17 + $0x30] sm:$0xff] %v1130_v1  ;;  %v1153_v5 = vadd.f32 %v1152_v61, %v1130_v1  ;;  %v1170_v6 = vmul.f32 %v1130_v1, %v1130_v1 }
 0x16a   : > { %3045 = shalt.err (!%p3042_p7)
}
 0x16b   : > { %s3046_s17 = scalar_lea.hbm %s4031_s24, 1024  ;;  %s3050_s21 = scalar_lea.hbm %s4192_s4, 2048 }
 0x16c   : > { %p3047_p9 = scmp.ne.s32.totalorder %s4031_s24, %s3046_s17  ;;  %p3051_p12 = scmp.lt.s32.totalorder %s4031_s24, %s4192_s4 }
 0x16d   : > { %p3052_p13 = scmp.lt.s32.totalorder %s3050_s21, %s3046_s17 }
 0x16e   : > { %p3048_p10 = pnand %p3047_p9, %p3350_p4 }
 0x16f   : > { %p3053_p0 = por %p3052_p13, %p3051_p12 }
 0x170   : > { %p3049_p11 = pneg %p3048_p10 }
 0x172   : > { %p3054_p1 = pnand %p3053_p0, %p3049_p11 }
 0x174   : > { %3057 = shalt.err (!%p3054_p1)
}
 0x175   : > { %s3250_s13 = smov 128   ;;  %s3251_s25 = smov 8   ;;  %v1154_v9 = vadd.f32 %v2763_v11, %v1153_v5  ;;  %v1177_v10 = vadd.f32 %v1176_v62, %v1170_v6  ;;  %v971_v14 = vpop.f32.mrf.mxu0  ;;  %v1147_v0 = vld [vmem:[#allocation9] sm:$0x1]  ;;  %v1163_v4 = vld [vmem:[#allocation10] sm:$0x1] }
 0x176   : > { %s4209_s26 = scalar_lea.sflag [#allocation5], %s4020_s12  ;;  %s3252_s12 = smov [#allocation10]  }
 0x177   : > { %2942 = dma.vmem_to_hbm [thread:$0]  (%p3350_p4), %s4033_s11, 1024, %s4031_s24, %s4209_s26, %s3250_s13, %s3250_s13, %s3251_s25   ;;  %v1155_v15 = vrot.slane %v1154_v9, 4  ;;  %v1178_v16 = vadd.f32 %v1177_v10, %v1171_v2  ;;  %v2713_v36 = vpop.f32.mrf.mxu0 }
 0x178   : > { %s1879_s20 = sshll.u32 %s3252_s12, 4  ;;  %s1880_s20 = int_to_ptr.vmem [resolvable:$true] %s1879_s20 }
 0x179   : > { %v1156_v19 = vadd.f32 %v1155_v15, %v1154_v9  ;;  %v1179_v20 = vrot.slane %v1178_v16, 4  ;;  %v981_v27 = vpop.f32.mrf.mxu0  ;;  %s3058_s11 = scalar_lea.vmem %s1880_s20, 16  ;;  %s3064_s24 = scalar_lea.vmem %s1880_s20, 32 }
 0x17a   : > { %p3059_p3 = scmp.ne.s32.totalorder %s1880_s20, %s3058_s11  ;;  %p3065_p7 = scmp.lt.s32.totalorder %s1880_s20, %s1880_s20 }
 0x17b   : > { %v1157_v21 = vrot.slane %v1156_v19, 2  ;;  %v1180_v56 = vadd.f32 %v1179_v20, %v1178_v16  ;;  %v2716_v32 = vpop.f32.mrf.mxu0  ;;  %p3066_p9 = scmp.lt.s32.totalorder %s3064_s24, %s3058_s11 }
 0x17c   : > { %p3060_p5 = pnand %p3059_p3, %p3340_p2 }
 0x17d   : > { %v1158_v22 = vadd.f32 %v1157_v21, %v1156_v19  ;;  %v1181_v23 = vrot.slane %v1180_v56, 2  ;;  %v991_v40 = vpop.f32.mrf.mxu0  ;;  %p3067_p10 = por %p3066_p9, %p3065_p7 }
 0x17e   : > { %p3061_p6 = pneg %p3060_p5 }
 0x17f   : > { %v1159_v28 = vrot.slane %v1158_v22, 1  ;;  %v1182_v60 = vadd.f32 %v1181_v23, %v1180_v56 }
 0x180   : > { %p3068_p11 = pnand %p3067_p10, %p3061_p6 }
 0x181   : > { %v1160_v30 = vadd.f32 %v1159_v28, %v1158_v22  ;;  %v1183_v31 = vrot.slane %v1182_v60, 1 }
 0x183   : > { %v1161_v37 = vadd.f32 %v1160_v30, %v1147_v0  ;;  %v1184_v38 = vadd.f32 %v1183_v31, %v1182_v60 }
 0x185   : > { %1162 = vst [vmem:[#allocation9] sm:$0x1] %v1161_v37  ;;  %v1185_v39 = vadd.f32 %v1184_v38, %v1163_v4 }
 0x187   : > { %1186 = vst [vmem:[#allocation10] sm:$0x1] %v1185_v39 }
 0x188   : > { %3071 = shalt.err (!%p3068_p11)
}
 0x189   : > { %2950 = dma.vmem_to_hbm [thread:$0]  (%p3340_p2), %s1880_s20, 16, %s4196_s8, [#allocation11]   ;;  %v2719_v41 = vpop.f32.mrf.mxu0  ;;  %v2842_v47 = vpop.f32.mrf.mxu1  ;;  %v1011_v18 = vadd.f32 %v4035_v44, %v3997_v13  ;;  %v1010_v3 = vadd.f32 %v971_v14, %v3999_v17  ;;  %v1013_v34 = vadd.f32 %v2713_v36, %v4001_v24  ;;  %v1012_v43 = vadd.f32 %v981_v27, %v4003_v29 }
 0x18a   : > { %v1015_v62 = vadd.f32 %v2716_v32, %v4005_v8  ;;  %v1014_v24 = vadd.f32 %v991_v40, %v4007_v12  ;;  %v1017_v21 = vadd.f32 %v2719_v41, %v4009_v46  ;;  %s1814_s22 = sshll.u32 %s3378_s14, 4  ;;  %s4210_s23 = sshll.u32 %s3238_s30, 10  ;;  %s4094_s22 = int_to_ptr.vmem [resolvable:$true] %s1814_s22 }
 0x18b   : > { %v1001_v42 = vpop.f32.mrf.mxu0  ;;  %v1419_v50 = vpop.f32.mrf.mxu1  ;;  %s4092_s12 = scalar_lea.hbm %s4191_s3, %s4210_s23  ;;  %s4211_s20 = sand.u32 1, %s3230_s28  }
 0x18c   : > { %v1016_v56 = vadd.f32 %v1001_v42, %v4011_v48  ;;  %s1794_s11 = scalar_lea.sflag [#allocation3], %s4211_s20  ;;  %s3082_s24 = scalar_lea.vmem %s4094_s22, 1024 }
 0x18d   : > { %v2798_v45 = vpop.f32.mrf.mxu0  ;;  %v2845_v52 = vpop.f32.mrf.mxu1  ;;  %p3083_p12 = scmp.ne.s32.totalorder %s4094_s22, %s3082_s24  ;;  %s3253_s30 = smov [#allocation2]  }
 0x18e   : > { %v1318_v33 = vadd.f32 %v2798_v45, %v1011_v18  ;;  %s3086_s0 = sshll.u32 %s3253_s30, 4  ;;  %s3087_s0 = int_to_ptr.vmem [resolvable:$false] %s3086_s0 }
 0x18f   : > { %v1278_v49 = vpop.f32.mrf.mxu0  ;;  %v1429_v54 = vpop.f32.mrf.mxu1  ;;  %p3084_p13 = pnand %p3083_p12, %p3350_p4  ;;  %s3088_s17 = scalar_lea.vmem %s3087_s0, 2048 }
 0x190   : > { %v1317_v57 = vadd.f32 %v1278_v49, %v1010_v3  ;;  %v1459_v61 = vadd.f32 %v2842_v47, %v1318_v33  ;;  %p3089_p1 = scmp.lt.s32.totalorder %s4094_s22, %s3087_s0  ;;  %p3090_p3 = scmp.lt.s32.totalorder %s3088_s17, %s3082_s24 }
 0x191   : > { %v2801_v51 = vpop.f32.mrf.mxu0  ;;  %v2848_v55 = vpop.f32.mrf.mxu1  ;;  %p3085_p0 = pneg %p3084_p13 }
 0x192   : > { %v1320_v11 = vadd.f32 %v2801_v51, %v1013_v34  ;;  %v1458_v13 = vadd.f32 %v1419_v50, %v1317_v57  ;;  %p3091_p5 = por %p3090_p3, %p3089_p1 }
 0x193   : > { %v1288_v53 = vpop.f32.mrf.mxu0  ;;  %v1439_v63 = vpop.f32.mrf.mxu1 }
 0x194   : > { %v1319_v44 = vadd.f32 %v1288_v53, %v1012_v43  ;;  %v1461_v10 = vadd.f32 %v2845_v52, %v1320_v11  ;;  %p3092_p6 = pnand %p3091_p5, %p3085_p0 }
 0x195   : > { %v2804_v35 = vpop.f32.mrf.mxu0  ;;  %v2851_v26 = vpop.f32.mrf.mxu1 }
 0x196   : > { %v1322_v6 = vadd.f32 %v2804_v35, %v1015_v62  ;;  %v1460_v19 = vadd.f32 %v1429_v54, %v1319_v44 }
 0x197   : > { %v1298_v59 = vpop.f32.mrf.mxu0  ;;  %v1449_v58 = vpop.f32.mrf.mxu1 }
 0x198   : > { %v1321_v20 = vadd.f32 %v1298_v59, %v1014_v24  ;;  %v1463_v22 = vadd.f32 %v2848_v55, %v1322_v6 }
 0x199   : > { %v2807_v25 = vpop.f32.mrf.mxu0 }
 0x19a   : > { %v1324_v31 = vadd.f32 %v2807_v25, %v1017_v21  ;;  %v1462_v38 = vadd.f32 %v1439_v63, %v1321_v20 }
 0x19b   : > { %v1308_v7 = vpop.f32.mrf.mxu0 }
 0x19c   : > { %v1323_v32 = vadd.f32 %v1308_v7, %v1016_v56  ;;  %v1465_v50 = vadd.f32 %v2851_v26, %v1324_v31 }
 0x19e   : > { %v1464_v51 = vadd.f32 %v1449_v58, %v1323_v32 }
 0x1a3   : > { %v2886_v1 = vpop.f32.mrf.mxu0 }
 0x1a4   : > { %v2930_v2 = vpop.f32.mrf.mxu1  ;;  %v1600_v5 = vadd.f32 %v2886_v1, %v1459_v61 }
 0x1a5   : > { %v1560_v17 = vpop.f32.mrf.mxu0 }
 0x1a6   : > { %v1698_v9 = vpop.f32.mrf.mxu1  ;;  %v1738_v14 = vadd.f32 %v2930_v2, %v1600_v5  ;;  %v1599_v15 = vadd.f32 %v1560_v17, %v1458_v13 }
 0x1a7   : > { %v2889_v29 = vpop.f32.mrf.mxu0 }
 0x1a8   : > { %v2933_v16 = vpop.f32.mrf.mxu1  ;;  %1746 = vst [vmem:[%s3378_s14 + $0x8] sm:$0xff] %v1738_v14  ;;  %v1737_v8 = vadd.f32 %v1698_v9, %v1599_v15  ;;  %v1602_v36 = vadd.f32 %v2889_v29, %v1461_v10  ;;  %v1771_v23 = vmul.f32 %v1738_v14, %v1738_v14 }
 0x1a9   : > { %v1570_v27 = vpop.f32.mrf.mxu0 }
 0x1aa   : > { %v1708_v12 = vpop.f32.mrf.mxu1  ;;  %1745 = vst [vmem:[%s3378_s14] sm:$0xff] %v1737_v8  ;;  %v1754_v28 = vadd.f32 %v1738_v14, %v1737_v8  ;;  %v1770_v60 = vmul.f32 %v1737_v8, %v1737_v8  ;;  %v1740_v0 = vadd.f32 %v2933_v16, %v1602_v36  ;;  %v1601_v30 = vadd.f32 %v1570_v27, %v1460_v19 }
 0x1ab   : > { %v2892_v4 = vpop.f32.mrf.mxu0 }
 0x1ac   : > { %v2936_v37 = vpop.f32.mrf.mxu1  ;;  %v1778_v39 = vadd.f32 %v1771_v23, %v1770_v60  ;;  %1748 = vst [vmem:[%s3378_s14 + $0x18] sm:$0xff] %v1740_v0  ;;  %v1739_v46 = vadd.f32 %v1708_v12, %v1601_v30  ;;  %v1604_v48 = vadd.f32 %v2892_v4, %v1463_v22  ;;  %v1773_v54 = vmul.f32 %v1740_v0, %v1740_v0 }
 0x1ad   : > { %v1580_v40 = vpop.f32.mrf.mxu0 }
 0x1ae   : > { %v1718_v41 = vpop.f32.mrf.mxu1  ;;  %1747 = vst [vmem:[%s3378_s14 + $0x10] sm:$0xff] %v1739_v46  ;;  %v1755_v42 = vadd.f32 %v1754_v28, %v1739_v46  ;;  %v1772_v45 = vmul.f32 %v1739_v46, %v1739_v46  ;;  %v1742_v47 = vadd.f32 %v2936_v37, %v1604_v48  ;;  %v1603_v49 = vadd.f32 %v1580_v40, %v1462_v38 }
 0x1af   : > { %v2895_v52 = vpop.f32.mrf.mxu0 }
 0x1b0   : > { %v2939_v53 = vpop.f32.mrf.mxu1  ;;  %v1779_v35 = vadd.f32 %v1778_v39, %v1772_v45  ;;  %1750 = vst [vmem:[%s3378_s14 + $0x28] sm:$0xff] %v1742_v47  ;;  %v1741_v55 = vadd.f32 %v1718_v41, %v1603_v49  ;;  %v1756_v59 = vadd.f32 %v1755_v42, %v1740_v0  ;;  %v1606_v63 = vadd.f32 %v2895_v52, %v1465_v50 }
 0x1b1   : > { %v1590_v18 = vpop.f32.mrf.mxu0  ;;  %v1775_v7 = vmul.f32 %v1742_v47, %v1742_v47 }
 0x1b2   : > { %1749 = vst [vmem:[%s3378_s14 + $0x20] sm:$0xff] %v1741_v55  ;;  %v1757_v25 = vadd.f32 %v1756_v59, %v1741_v55  ;;  %v1774_v3 = vmul.f32 %v1741_v55, %v1741_v55  ;;  %v1780_v33 = vadd.f32 %v1779_v35, %v1773_v54  ;;  %v1605_v26 = vadd.f32 %v1590_v18, %v1464_v51  ;;  %v1728_v57 = vpop.f32.mrf.mxu1 }
 0x1b3   : > { %v1744_v34 = vadd.f32 %v2939_v53, %v1606_v63 }
 0x1b4   : > { %v1781_v58 = vadd.f32 %v1780_v33, %v1774_v3  ;;  %v1743_v43 = vadd.f32 %v1728_v57, %v1605_v26  ;;  %v1758_v61 = vadd.f32 %v1757_v25, %v1742_v47 }
 0x1b5   : > { %1752 = vst [vmem:[%s3378_s14 + $0x38] sm:$0xff] %v1744_v34 }
 0x1b6   : > { %1751 = vst [vmem:[%s3378_s14 + $0x30] sm:$0xff] %v1743_v43  ;;  %v1759_v11 = vadd.f32 %v1758_v61, %v1743_v43  ;;  %v1776_v62 = vmul.f32 %v1743_v43, %v1743_v43  ;;  %v1782_v1 = vadd.f32 %v1781_v58, %v1775_v7 }
 0x1b7   : > { %3095 = shalt.err (!%p3092_p6)
}
 0x1b8   : > { %s3096_s14 = scalar_lea.hbm %s4092_s12, 1024  ;;  %s3100_s26 = scalar_lea.hbm %s4191_s3, 2048 }
 0x1b9   : > { %p3097_p7 = scmp.ne.s32.totalorder %s4092_s12, %s3096_s14  ;;  %p3101_p11 = scmp.lt.s32.totalorder %s4092_s12, %s4191_s3 }
 0x1ba   : > { %p3102_p12 = scmp.lt.s32.totalorder %s3100_s26, %s3096_s14 }
 0x1bb   : > { %p3098_p9 = pnand %p3097_p7, %p3350_p4 }
 0x1bc   : > { %p3103_p13 = por %p3102_p12, %p3101_p11 }
 0x1bd   : > { %p3099_p10 = pneg %p3098_p9 }
 0x1bf   : > { %p3104_p0 = pnand %p3103_p13, %p3099_p10 }
 0x1c1   : > { %3107 = shalt.err (!%p3104_p0)
}
 0x1c2   : > { %2941 = dma.vmem_to_hbm [thread:$0]  (%p3350_p4), %s4094_s22, 1024, %s4092_s12, %s1794_s11, %s3250_s13, %s3250_s13, %s3251_s25   ;;  %v1777_v2 = vmul.f32 %v1744_v34, %v1744_v34  ;;  %v1760_v13 = vadd.f32 %v1759_v11, %v1744_v34  ;;  %v1783_v44 = vadd.f32 %v1782_v1, %v1776_v62  ;;  %v1753_v19 = vld [vmem:[#allocation6] sm:$0x1]  ;;  %v1769_v36 = vld [vmem:[#allocation7] sm:$0x1] }
 0x1c3   : > { %s3254_s16 = smov [#allocation6]   ;;  %s3255_s13 = smov [#allocation7]  }
 0x1c4   : > { %v1761_v5 = vrot.slane %v1760_v13, 4  ;;  %v1784_v6 = vadd.f32 %v1783_v44, %v1777_v2  ;;  %s1846_s24 = sshll.u32 %s3254_s16, 4  ;;  %s1857_s25 = sshll.u32 %s3255_s13, 4  ;;  %s1847_s24 = int_to_ptr.vmem [resolvable:$true] %s1846_s24  ;;  %s1858_s25 = int_to_ptr.vmem [resolvable:$true] %s1857_s25 }
 0x1c5   : > { %s3256_s22 = smov [#allocation9]   ;;  %s3108_s11 = scalar_lea.vmem %s1847_s24, 16 }
 0x1c6   : > { %v1762_v17 = vadd.f32 %v1761_v5, %v1760_v13  ;;  %v1785_v9 = vrot.slane %v1784_v6, 4  ;;  %s1868_s12 = sshll.u32 %s3256_s22, 4  ;;  %p3109_p4 = scmp.ne.s32.totalorder %s1847_s24, %s3108_s11  ;;  %s4123_s12 = int_to_ptr.vmem [resolvable:$true] %s1868_s12 }
 0x1c7   : > { %s3114_s0 = scalar_lea.vmem %s1847_s24, 32  ;;  %p3115_p5 = scmp.lt.s32.totalorder %s1847_s24, %s1847_s24 }
 0x1c8   : > { %v1786_v24 = vadd.f32 %v1785_v9, %v1784_v6  ;;  %v1763_v10 = vrot.slane %v1762_v17, 2  ;;  %p3110_p1 = pnand %p3109_p4, %p3340_p2  ;;  %p3116_p6 = scmp.lt.s32.totalorder %s3114_s0, %s3108_s11 }
 0x1ca   : > { %v1787_v14 = vrot.slane %v1786_v24, 2  ;;  %v1764_v15 = vadd.f32 %v1763_v10, %v1762_v17  ;;  %p3111_p3 = pneg %p3110_p1  ;;  %p3117_p7 = por %p3116_p6, %p3115_p5 }
 0x1cc   : > { %v1788_v29 = vadd.f32 %v1787_v14, %v1786_v24  ;;  %v1765_v16 = vrot.slane %v1764_v15, 1  ;;  %p3118_p9 = pnand %p3117_p7, %p3111_p3 }
 0x1ce   : > { %v1789_v20 = vrot.slane %v1788_v29, 1  ;;  %v1766_v8 = vadd.f32 %v1765_v16, %v1764_v15 }
 0x1d0   : > { %v1790_v21 = vadd.f32 %v1789_v20, %v1788_v29  ;;  %v1767_v56 = vadd.f32 %v1766_v8, %v1753_v19 }
 0x1d2   : > { %v1791_v22 = vadd.f32 %v1790_v21, %v1769_v36  ;;  %1768 = vst [vmem:[#allocation6] sm:$0x1] %v1767_v56 }
 0x1d3   : > { %3121 = shalt.err (!%p3118_p9)
}
 0x1d4   : > { %2944 = dma.vmem_to_hbm [thread:$0]  (%p3340_p2), %s1847_s24, 16, %s4193_s5, [#allocation5]   ;;  %1792 = vst [vmem:[#allocation7] sm:$0x1] %v1791_v22 }
 0x1d5   : > { %s3132_s23 = scalar_lea.vmem %s1858_s25, 16  ;;  %s3138_s21 = scalar_lea.vmem %s1858_s25, 32 }
 0x1d6   : > { %p3133_p10 = scmp.ne.s32.totalorder %s1858_s25, %s3132_s23  ;;  %p3139_p13 = scmp.lt.s32.totalorder %s1858_s25, %s1858_s25 }
 0x1d7   : > { %p3140_p0 = scmp.lt.s32.totalorder %s3138_s21, %s3132_s23 }
 0x1d8   : > { %p3134_p11 = pnand %p3133_p10, %p3340_p2 }
 0x1d9   : > { %p3141_p4 = por %p3140_p0, %p3139_p13 }
 0x1da   : > { %p3135_p12 = pneg %p3134_p11 }
 0x1dc   : > { %p3142_p1 = pnand %p3141_p4, %p3135_p12 }
 0x1de   : > { %3145 = shalt.err (!%p3142_p1)
}
 0x1df   : > { %2946 = dma.vmem_to_hbm [thread:$0]  (%p3340_p2), %s1858_s25, 16, %s4194_s6, [#allocation8]  }
 0x1e0   : > { %s3156_s30 = scalar_lea.vmem %s4123_s12, 16  ;;  %s3162_s16 = scalar_lea.vmem %s4123_s12, 32 }
 0x1e1   : > { %p3157_p3 = scmp.ne.s32.totalorder %s4123_s12, %s3156_s30  ;;  %p3163_p7 = scmp.lt.s32.totalorder %s4123_s12, %s4123_s12 }
 0x1e2   : > { %p3164_p9 = scmp.lt.s32.totalorder %s3162_s16, %s3156_s30 }
 0x1e3   : > { %p3158_p5 = pnand %p3157_p3, %p3340_p2 }
 0x1e4   : > { %p3165_p10 = por %p3164_p9, %p3163_p7 }
 0x1e5   : > { %p3159_p6 = pneg %p3158_p5 }
 0x1e7   : > { %p3166_p11 = pnand %p3165_p10, %p3159_p6 }
 0x1e9   : > { %3169 = shalt.err (!%p3166_p11)
}
 0x1ea   : > { %2948 = dma.vmem_to_hbm [thread:$0]  (%p3340_p2), %s4123_s12, 16, %s4195_s7, [#allocation8]  }
 0x1eb   : > { %3205 = dma.done.wait (%p3340_p2), [#allocation5], 16  }
 0x1ec   : > { %3207 = vsyncadd (%p3340_p2), [#allocation5], 4294967280 }
 0x1ed   : > { %3209 = dma.done.wait (%p3340_p2), [#allocation8], 32  }
 0x1ee   : > { %3211 = vsyncadd (%p3340_p2), [#allocation8], 4294967264 }
 0x1ef   : > { %3213 = dma.done.wait (%p3340_p2), [#allocation11], 16  }
 0x1f0   : > { %3215 = vsyncadd (%p3340_p2), [#allocation11], 4294967280 }
 0x1f1 PF: > { %p2976_p12 = scmp.ge.s32.totalorder %s3246_s10, 2  ;;  %s1907_s25 = sand.u32 1, %s3226_s27  }
 0x1f2   : > { %s1908_s22 = scalar_lea.sflag [#allocation3], %s1907_s25 }
 0x1f3   : > { %p2962_p13 = pnand %p2976_p12, %p3359_p8 }
 0x1f5   : > { %p2963_p0 = pneg %p2962_p13 }
 0x1f7   : > { %3217 = dma.done.wait (%p2963_p0), %s1908_s22, 1024  }
 0x1f8   : > { %3219 = vsyncadd (%p2963_p0), %s1908_s22, 4294966272  ;;  %s4212_s12 = sadd.s32 4294967294, %s3246_s10  }
 0x1f9   : > { %s1916_s11 = sand.u32 1, %s4212_s12  }
 0x1fa   : > { %s1917_s0 = scalar_lea.sflag [#allocation5], %s1916_s11 }
 0x1fb   : > { %3221 = dma.done.wait (%p2963_p0), %s1917_s0, 1024  }
 0x1fc   : > { %3223 = vsyncadd (%p2963_p0), %s1917_s0, 4294966272  ;;  %s27_s10 = sadd.s32 1, %s3246_s10   ;;  %s4213_s15 = sld [smem:[#allocation17_spill]] }
 0x1fd   : > { %p24_p2 = scmp.ge.s32.totalorder %s27_s10, 4   ;;  %s4214_s27 = smov %s3230_s28 }
 0x1fe   : > { %s4215_s28 = smov %s3234_s29  ;;  %s4216_s29 = smov %s3365_s19 }
 0x1ff   : > { %s4217_s30 = smov %s3242_s9  ;;  %26 = sbr.rel (!%p24_p2) target bundleno = 10 (0xa), region = 134 }
 0x202   : > { %s4218_s9 = smov %s4213_s15 }
 0x204   :  { %1922 = vsyncpa [#allocation3], 1 }
 0x205   :  { %1924 = vsyncpa [#allocation3 + $0x1], 1 }
 0x206   :  { %1925 = vsyncpa [#allocation5], 1 }
 0x207   :  { %1927 = vsyncpa [#allocation5 + $0x1], 1 }
 0x208   :  { %1928 = vsyncpa [#allocation8], 1 }
 0x209   :  { %1929 = vsyncpa [#allocation11], 1 }

</bundles_post_ra>
